<compile_context>
chip_gen: v6e
topology: v6e:2x2x1
jax: 0.10.0
libtpu: 0.0.40
codegen_flags: <defaults>
</compile_context>

<pallas_src>
import functools

import jax
import jax.numpy as jnp
from jax.experimental import pallas as pl
from jax.experimental.pallas import tpu as pltpu

MAX_DEC_LENGTH = 100
MAX_TYPE_NUM = 5
LN_EPS = 1e-12  # BertLayerNorm default eps


def _ln(x, gamma, beta, eps=LN_EPS):
    mu = jnp.mean(x, axis=-1, keepdims=True)
    var = jnp.mean((x - mu) ** 2, axis=-1, keepdims=True)
    return (x - mu) * jax.lax.rsqrt(var + eps) * gamma + beta


def _kernel(A,
            inds_ref,    # [BB, T] int32   previous-prediction indices
            ans_ref,     # [A, H]          answer-vocab embeddings (raw)
            ocr_ref,     # [BB, O, H]      OCR embeddings (raw)
            pos_ref,     # [T, H]          position embedding rows 0..T-1
            typ_ref,     # [2, H]          token-type rows 0 (ans) / 1 (ocr)
            par_ref,     # [6, H]          ans_g, ans_b, ocr_g, ocr_b, emb_g, emb_b
            out_ref):    # [BB, T, H]
    f32 = jnp.float32
    BB, T = inds_ref.shape
    O = ocr_ref.shape[1]
    H = ans_ref.shape[1]

    idx = inds_ref[...]                                   # [BB, T] int32
    ans = ans_ref[...].astype(f32)                        # [A, H]
    ocr = ocr_ref[...].astype(f32)                        # [BB, O, H]

    # ---- one-hot gather of the RAW (un-normalized) rows on the MXU --------
    # idx < A selects a row of ans_emb; idx >= A selects row (idx - A) of this
    # batch element's ocr_emb.  Out-of-range idx -> all-zero row (no OOB read).
    oh_ans = (idx[:, :, None] ==
              jax.lax.broadcasted_iota(jnp.int32, (BB, T, A), 2)).astype(f32)
    raw = jnp.dot(oh_ans.reshape(BB * T, A), ans,
                  preferred_element_type=f32,
                  precision=jax.lax.Precision.HIGHEST).reshape(BB, T, H)

    oh_ocr = ((idx - A)[:, :, None] ==
              jax.lax.broadcasted_iota(jnp.int32, (BB, T, O), 2)).astype(f32)
    raw = raw + jnp.einsum('bto,boh->bth', oh_ocr, ocr,
                           preferred_element_type=f32,
                           precision=jax.lax.Precision.HIGHEST)

    # ---- LayerNorm only the T gathered rows (ans vs ocr params per row) ---
    is_ocr = (idx >= A).astype(f32)[:, :, None]           # [BB, T, 1]

    def prow(k):                                          # -> (1, 1, H)
        return par_ref[pl.ds(k, 1), :].astype(f32)[None]

    ans_g, ans_b = prow(0), prow(1)
    ocr_g, ocr_b = prow(2), prow(3)
    emb_g, emb_b = prow(4), prow(5)
    gamma = ans_g + is_ocr * (ocr_g - ans_g)
    beta = ans_b + is_ocr * (ocr_b - ans_b)
    raw_n = _ln(raw, gamma, beta)

    # ---- position + token-type embedding, LayerNorm, residual add ---------
    typ0 = typ_ref[pl.ds(0, 1), :].astype(f32)[None]      # (1, 1, H)
    typ1 = typ_ref[pl.ds(1, 1), :].astype(f32)[None]
    typ = typ0 + is_ocr * (typ1 - typ0)                   # [BB, T, H]
    emb = pos_ref[...].astype(f32)[None] + typ            # [BB, T, H]
    emb_n = _ln(emb, emb_g, emb_b)

    # TODO(synk): emb_dropout is identity here (eval mode); training-mode
    # dropout is not implemented.
    out_ref[...] = (raw_n + emb_n).astype(out_ref.dtype)


def prev_pred_embeddings(ans_emb, ocr_emb, prev_inds, pos_table, type_table,
                         params, block_b=8):
    """params rows: [ans_gamma, ans_beta, ocr_gamma, ocr_beta, emb_gamma, emb_beta], (6, H)."""
    A, H = ans_emb.shape
    B, O, _ = ocr_emb.shape
    _, T = prev_inds.shape

    # Batch block: must divide B and keep the (BB, T) index block sublane-legal
    # (BB % 8 == 0 or BB == B).  Fallback: whole batch in one step.
    if B % block_b != 0 or (block_b % 8 != 0 and block_b != B):
        block_b = B
    BB = block_b
    grid = (B // BB,)

    kernel = functools.partial(_kernel, A)

    return pl.pallas_call(
        kernel,
        out_shape=jax.ShapeDtypeStruct((B, T, H), jnp.float32),
        grid=grid,
        in_specs=[
            pl.BlockSpec((BB, T), lambda i: (i, 0)),        # prev_inds block
            pl.BlockSpec((A, H), lambda i: (0, 0)),         # ans_emb (shared)
            pl.BlockSpec((BB, O, H), lambda i: (i, 0, 0)),  # ocr_emb block
            pl.BlockSpec((T, H), lambda i: (0, 0)),         # pos_table[:T]
            pl.BlockSpec((2, H), lambda i: (0, 0)),         # type_table[:2]
            pl.BlockSpec((6, H), lambda i: (0, 0)),         # layer-norm params
        ],
        out_specs=pl.BlockSpec((BB, T, H), lambda i: (i, 0, 0)),
        compiler_params=pltpu.CompilerParams(
            dimension_semantics=("parallel",)),
    )(prev_inds.astype(jnp.int32),
      ans_emb, ocr_emb,
      pos_table[:T], type_table[:2], params)


def reference(ans_emb, ocr_emb, prev_inds, pos_table, type_table, params):
    """Pure-JAX port of the PyTorch forward (eval mode) for verification."""
    ag, ab, og, ob, eg, eb = params
    B, T = prev_inds.shape
    A = ans_emb.shape[0]
    ans_n = _ln(ans_emb, ag, ab)
    ocr_n = _ln(ocr_emb, og, ob)
    cat = jnp.concatenate(
        [jnp.broadcast_to(ans_n[None], (B,) + ans_n.shape), ocr_n], axis=1)
    raw = jnp.take_along_axis(cat, prev_inds[..., None], axis=1)
    pos = pos_table[jnp.arange(T)][None]
    typ = type_table[(prev_inds >= A).astype(jnp.int32)]
    emb = _ln(pos + typ, eg, eb)
    return raw + emb


if __name__ == "__main__":
    B, A, O, T, H = 16, 16, 8, 8, 128   # batch, ans_num, ocr_num, seq_len, hidden
    key = jax.random.PRNGKey(0)
    ks = jax.random.split(key, 8)

    ans_emb = jax.random.normal(ks[0], (A, H), jnp.float32)
    ocr_emb = jax.random.normal(ks[1], (B, O, H), jnp.float32)
    prev_inds = jax.random.randint(ks[2], (B, T), 0, A + O, dtype=jnp.int32)

    # Deterministic "parameters" (module __init__ shapes): embedding tables + 3 LayerNorms.
    pos_table = 0.02 * jax.random.normal(ks[3], (MAX_DEC_LENGTH, H), jnp.float32)
    type_table = 0.02 * jax.random.normal(ks[4], (MAX_TYPE_NUM, H), jnp.float32)
    gammas = 1.0 + 0.1 * jax.random.normal(ks[5], (3, H), jnp.float32)
    betas = 0.1 * jax.random.normal(ks[6], (3, H), jnp.float32)
    params = jnp.stack([gammas[0], betas[0], gammas[1], betas[1],
                        gammas[2], betas[2]])

    out = prev_pred_embeddings(ans_emb, ocr_emb, prev_inds, pos_table,
                               type_table, params)
    out = jax.block_until_ready(out)

    ref = reference(ans_emb, ocr_emb, prev_inds, pos_table, type_table, params)
    assert out.shape == (B, T, H)
    assert jnp.allclose(out, ref, atol=1e-4, rtol=1e-4), "mismatch vs JAX reference"
    print("KERNEL_OK")
</pallas_src>

<mosaic_0001>
module attributes {stable_mosaic.version = 11 : i64} {
  func.func @_kernel(%arg0: i32, %arg1: memref<8x8xi32, #tpu.memory_space<vmem>>, %arg2: memref<16x128xf32, #tpu.memory_space<vmem>>, %arg3: memref<8x8x128xf32, #tpu.memory_space<vmem>>, %arg4: memref<8x128xf32, #tpu.memory_space<vmem>>, %arg5: memref<2x128xf32, #tpu.memory_space<vmem>>, %arg6: memref<6x128xf32, #tpu.memory_space<vmem>>, %arg7: memref<8x8x128xf32, #tpu.memory_space<vmem>>) attributes {dimension_semantics = [#tpu.dimension_semantics<parallel>], iteration_bounds = array<i64: 2>, scalar_prefetch = 0 : i64, scratch_operands = 0 : i64, tpu.core_type = #tpu.core_type<tc>, window_params = [{transform_indices = @transform_0, window_bounds = array<i64: 8, 8>}, {pipeline_mode = #tpu.pipeline_mode<synchronous>, transform_indices = @transform_1, window_bounds = array<i64: 16, 128>}, {transform_indices = @transform_2, window_bounds = array<i64: 8, 8, 128>}, {pipeline_mode = #tpu.pipeline_mode<synchronous>, transform_indices = @transform_3, window_bounds = array<i64: 8, 128>}, {pipeline_mode = #tpu.pipeline_mode<synchronous>, transform_indices = @transform_4, window_bounds = array<i64: 2, 128>}, {pipeline_mode = #tpu.pipeline_mode<synchronous>, transform_indices = @transform_5, window_bounds = array<i64: 6, 128>}, {transform_indices = @transform_6, window_bounds = array<i64: 8, 8, 128>}]} {
    %c0 = arith.constant 0 : index
    %c0_0 = arith.constant 0 : index
    %0 = vector.load %arg1[%c0, %c0_0] : memref<8x8xi32, #tpu.memory_space<vmem>>, vector<8x8xi32>
    %c0_1 = arith.constant 0 : index
    %c0_2 = arith.constant 0 : index
    %1 = vector.load %arg2[%c0_1, %c0_2] : memref<16x128xf32, #tpu.memory_space<vmem>>, vector<16x128xf32>
    %c0_3 = arith.constant 0 : index
    %c0_4 = arith.constant 0 : index
    %c0_5 = arith.constant 0 : index
    %2 = vector.load %arg3[%c0_3, %c0_4, %c0_5] : memref<8x8x128xf32, #tpu.memory_space<vmem>>, vector<8x8x128xf32>
    %3 = vector.shape_cast %0 : vector<8x8xi32> to vector<8x8x1xi32>
    %4 = tpu.iota {dimensions = array<i32: 2>} : vector<8x8x16xi32>
    %5 = vector.broadcast %3 : vector<8x8x1xi32> to vector<8x8x16xi32>
    %6 = arith.cmpi eq, %5, %4 : vector<8x8x16xi32>
    %7 = arith.extui %6 : vector<8x8x16xi1> to vector<8x8x16xi32>
    %8 = arith.sitofp %7 : vector<8x8x16xi32> to vector<8x8x16xf32>
    %9 = vector.shape_cast %8 : vector<8x8x16xf32> to vector<64x16xf32>
    %cst = arith.constant dense<0.000000e+00> : vector<64x128xf32>
    %10 = tpu.matmul %9, %1, %cst {dimension_numbers = #tpu.dot_dimension_numbers<[1], [0], [0], [1], [0, 0, 1, 1], [], []>, precision = #tpu.contract_precision<fp32>} : vector<64x16xf32>, vector<16x128xf32>, vector<64x128xf32> -> vector<64x128xf32>
    %11 = vector.shape_cast %10 : vector<64x128xf32> to vector<8x8x128xf32>
    %c16_i32 = arith.constant 16 : i32
    %12 = vector.broadcast %c16_i32 : i32 to vector<8x8xi32>
    %13 = arith.subi %0, %12 : vector<8x8xi32>
    %14 = vector.shape_cast %13 : vector<8x8xi32> to vector<8x8x1xi32>
    %15 = tpu.iota {dimensions = array<i32: 2>} : vector<8x8x8xi32>
    %16 = vector.broadcast %14 : vector<8x8x1xi32> to vector<8x8x8xi32>
    %17 = arith.cmpi eq, %16, %15 : vector<8x8x8xi32>
    %18 = arith.extui %17 : vector<8x8x8xi1> to vector<8x8x8xi32>
    %19 = arith.sitofp %18 : vector<8x8x8xi32> to vector<8x8x8xf32>
    "tpu.trace_start"() <{level = 10 : i32, message = "bto,boh->bth"}> : () -> ()
    %cst_6 = arith.constant dense<0.000000e+00> : vector<8x8x128xf32>
    %20 = tpu.matmul %19, %2, %cst_6 {dimension_numbers = #tpu.dot_dimension_numbers<[2], [1], [1], [2], [0, 0, 0, 1, 1, 2], [0], [0]>, precision = #tpu.contract_precision<fp32>} : vector<8x8x8xf32>, vector<8x8x128xf32>, vector<8x8x128xf32> -> vector<8x8x128xf32>
    "tpu.trace_stop"() : () -> ()
    %21 = arith.addf %11, %20 : vector<8x8x128xf32>
    %c16_i32_7 = arith.constant 16 : i32
    %22 = vector.broadcast %c16_i32_7 : i32 to vector<8x8xi32>
    %23 = arith.cmpi sge, %0, %22 : vector<8x8xi32>
    %24 = arith.extui %23 : vector<8x8xi1> to vector<8x8xi32>
    %25 = arith.sitofp %24 : vector<8x8xi32> to vector<8x8xf32>
    %26 = vector.shape_cast %25 : vector<8x8xf32> to vector<8x8x1xf32>
    %c0_8 = arith.constant 0 : index
    %c0_9 = arith.constant 0 : index
    %27 = vector.load %arg6[%c0_8, %c0_9] : memref<6x128xf32, #tpu.memory_space<vmem>>, vector<1x128xf32>
    %28 = vector.shape_cast %27 : vector<1x128xf32> to vector<1x1x128xf32>
    %c1 = arith.constant 1 : index
    %c0_10 = arith.constant 0 : index
    %29 = vector.load %arg6[%c1, %c0_10] : memref<6x128xf32, #tpu.memory_space<vmem>>, vector<1x128xf32>
    %30 = vector.shape_cast %29 : vector<1x128xf32> to vector<1x1x128xf32>
    %c2 = arith.constant 2 : index
    %c0_11 = arith.constant 0 : index
    %31 = vector.load %arg6[%c2, %c0_11] : memref<6x128xf32, #tpu.memory_space<vmem>>, vector<1x128xf32>
    %32 = vector.shape_cast %31 : vector<1x128xf32> to vector<1x1x128xf32>
    %c3 = arith.constant 3 : index
    %c0_12 = arith.constant 0 : index
    %33 = vector.load %arg6[%c3, %c0_12] : memref<6x128xf32, #tpu.memory_space<vmem>>, vector<1x128xf32>
    %34 = vector.shape_cast %33 : vector<1x128xf32> to vector<1x1x128xf32>
    %c4 = arith.constant 4 : index
    %c0_13 = arith.constant 0 : index
    %35 = vector.load %arg6[%c4, %c0_13] : memref<6x128xf32, #tpu.memory_space<vmem>>, vector<1x128xf32>
    %36 = vector.shape_cast %35 : vector<1x128xf32> to vector<1x1x128xf32>
    %c5 = arith.constant 5 : index
    %c0_14 = arith.constant 0 : index
    %37 = vector.load %arg6[%c5, %c0_14] : memref<6x128xf32, #tpu.memory_space<vmem>>, vector<1x128xf32>
    %38 = vector.shape_cast %37 : vector<1x128xf32> to vector<1x1x128xf32>
    %39 = arith.subf %32, %28 : vector<1x1x128xf32>
    %40 = vector.broadcast %26 : vector<8x8x1xf32> to vector<8x8x128xf32>
    %41 = vector.broadcast %39 : vector<1x1x128xf32> to vector<8x8x128xf32>
    %42 = arith.mulf %40, %41 : vector<8x8x128xf32>
    %43 = vector.broadcast %28 : vector<1x1x128xf32> to vector<8x8x128xf32>
    %44 = arith.addf %43, %42 : vector<8x8x128xf32>
    %45 = arith.subf %34, %30 : vector<1x1x128xf32>
    %46 = vector.broadcast %26 : vector<8x8x1xf32> to vector<8x8x128xf32>
    %47 = vector.broadcast %45 : vector<1x1x128xf32> to vector<8x8x128xf32>
    %48 = arith.mulf %46, %47 : vector<8x8x128xf32>
    %49 = vector.broadcast %30 : vector<1x1x128xf32> to vector<8x8x128xf32>
    %50 = arith.addf %49, %48 : vector<8x8x128xf32>
    %cst_15 = arith.constant dense<0.000000e+00> : vector<8x8xf32>
    %51 = vector.multi_reduction <add>, %21, %cst_15 [2] : vector<8x8x128xf32> to vector<8x8xf32>
    %52 = vector.shape_cast %51 : vector<8x8xf32> to vector<8x8x1xf32>
    %cst_16 = arith.constant 1.280000e+02 : f32
    %53 = vector.broadcast %cst_16 : f32 to vector<8x8x1xf32>
    %54 = arith.divf %52, %53 : vector<8x8x1xf32>
    %55 = vector.broadcast %54 : vector<8x8x1xf32> to vector<8x8x128xf32>
    %56 = arith.subf %21, %55 : vector<8x8x128xf32>
    %57 = arith.mulf %56, %56 : vector<8x8x128xf32>
    %cst_17 = arith.constant dense<0.000000e+00> : vector<8x8xf32>
    %58 = vector.multi_reduction <add>, %57, %cst_17 [2] : vector<8x8x128xf32> to vector<8x8xf32>
    %59 = vector.shape_cast %58 : vector<8x8xf32> to vector<8x8x1xf32>
    %cst_18 = arith.constant 1.280000e+02 : f32
    %60 = vector.broadcast %cst_18 : f32 to vector<8x8x1xf32>
    %61 = arith.divf %59, %60 : vector<8x8x1xf32>
    %62 = vector.broadcast %54 : vector<8x8x1xf32> to vector<8x8x128xf32>
    %63 = arith.subf %21, %62 : vector<8x8x128xf32>
    %cst_19 = arith.constant 9.99999996E-13 : f32
    %64 = vector.broadcast %cst_19 : f32 to vector<8x8x1xf32>
    %65 = arith.addf %61, %64 : vector<8x8x1xf32>
    %66 = math.rsqrt %65 : vector<8x8x1xf32>
    %67 = vector.broadcast %66 : vector<8x8x1xf32> to vector<8x8x128xf32>
    %68 = arith.mulf %63, %67 : vector<8x8x128xf32>
    %69 = arith.mulf %68, %44 : vector<8x8x128xf32>
    %70 = arith.addf %69, %50 : vector<8x8x128xf32>
    %c0_20 = arith.constant 0 : index
    %c0_21 = arith.constant 0 : index
    %71 = vector.load %arg5[%c0_20, %c0_21] : memref<2x128xf32, #tpu.memory_space<vmem>>, vector<1x128xf32>
    %72 = vector.shape_cast %71 : vector<1x128xf32> to vector<1x1x128xf32>
    %c1_22 = arith.constant 1 : index
    %c0_23 = arith.constant 0 : index
    %73 = vector.load %arg5[%c1_22, %c0_23] : memref<2x128xf32, #tpu.memory_space<vmem>>, vector<1x128xf32>
    %74 = vector.shape_cast %73 : vector<1x128xf32> to vector<1x1x128xf32>
    %75 = arith.subf %74, %72 : vector<1x1x128xf32>
    %76 = vector.broadcast %26 : vector<8x8x1xf32> to vector<8x8x128xf32>
    %77 = vector.broadcast %75 : vector<1x1x128xf32> to vector<8x8x128xf32>
    %78 = arith.mulf %76, %77 : vector<8x8x128xf32>
    %79 = vector.broadcast %72 : vector<1x1x128xf32> to vector<8x8x128xf32>
    %80 = arith.addf %79, %78 : vector<8x8x128xf32>
    %c0_24 = arith.constant 0 : index
    %c0_25 = arith.constant 0 : index
    %81 = vector.load %arg4[%c0_24, %c0_25] : memref<8x128xf32, #tpu.memory_space<vmem>>, vector<8x128xf32>
    %82 = vector.shape_cast %81 : vector<8x128xf32> to vector<1x8x128xf32>
    %83 = vector.broadcast %82 : vector<1x8x128xf32> to vector<8x8x128xf32>
    %84 = arith.addf %83, %80 : vector<8x8x128xf32>
    %cst_26 = arith.constant dense<0.000000e+00> : vector<8x8xf32>
    %85 = vector.multi_reduction <add>, %84, %cst_26 [2] : vector<8x8x128xf32> to vector<8x8xf32>
    %86 = vector.shape_cast %85 : vector<8x8xf32> to vector<8x8x1xf32>
    %cst_27 = arith.constant 1.280000e+02 : f32
    %87 = vector.broadcast %cst_27 : f32 to vector<8x8x1xf32>
    %88 = arith.divf %86, %87 : vector<8x8x1xf32>
    %89 = vector.broadcast %88 : vector<8x8x1xf32> to vector<8x8x128xf32>
    %90 = arith.subf %84, %89 : vector<8x8x128xf32>
    %91 = arith.mulf %90, %90 : vector<8x8x128xf32>
    %cst_28 = arith.constant dense<0.000000e+00> : vector<8x8xf32>
    %92 = vector.multi_reduction <add>, %91, %cst_28 [2] : vector<8x8x128xf32> to vector<8x8xf32>
    %93 = vector.shape_cast %92 : vector<8x8xf32> to vector<8x8x1xf32>
    %cst_29 = arith.constant 1.280000e+02 : f32
    %94 = vector.broadcast %cst_29 : f32 to vector<8x8x1xf32>
    %95 = arith.divf %93, %94 : vector<8x8x1xf32>
    %96 = vector.broadcast %88 : vector<8x8x1xf32> to vector<8x8x128xf32>
    %97 = arith.subf %84, %96 : vector<8x8x128xf32>
    %cst_30 = arith.constant 9.99999996E-13 : f32
    %98 = vector.broadcast %cst_30 : f32 to vector<8x8x1xf32>
    %99 = arith.addf %95, %98 : vector<8x8x1xf32>
    %100 = math.rsqrt %99 : vector<8x8x1xf32>
    %101 = vector.broadcast %100 : vector<8x8x1xf32> to vector<8x8x128xf32>
    %102 = arith.mulf %97, %101 : vector<8x8x128xf32>
    %103 = vector.broadcast %36 : vector<1x1x128xf32> to vector<8x8x128xf32>
    %104 = arith.mulf %102, %103 : vector<8x8x128xf32>
    %105 = vector.broadcast %38 : vector<1x1x128xf32> to vector<8x8x128xf32>
    %106 = arith.addf %104, %105 : vector<8x8x128xf32>
    %107 = arith.addf %70, %106 : vector<8x8x128xf32>
    %c0_31 = arith.constant 0 : index
    %c0_32 = arith.constant 0 : index
    %c0_33 = arith.constant 0 : index
    %108 = vector.load %arg7[%c0_31, %c0_32, %c0_33] : memref<8x8x128xf32, #tpu.memory_space<vmem>>, vector<8x8x128xf32>
    tpu.vector_store %arg7[%c0_31, %c0_32, %c0_33], %107 {strides = array<i32>} : memref<8x8x128xf32, #tpu.memory_space<vmem>>, vector<8x8x128xf32>,
    return
  }
  func.func @transform_0(%arg0: i32) -> (i32, i32) {
    %c0_i32 = arith.constant 0 : i32
    %c0_i32_0 = arith.constant 0 : i32
    return %arg0, %c0_i32 : i32, i32
  }
  func.func @transform_1(%arg0: i32) -> (i32, i32) {
    %c0_i32 = arith.constant 0 : i32
    %c0_i32_0 = arith.constant 0 : i32
    %c0_i32_1 = arith.constant 0 : i32
    return %c0_i32, %c0_i32_0 : i32, i32
  }
  func.func @transform_2(%arg0: i32) -> (i32, i32, i32) {
    %c0_i32 = arith.constant 0 : i32
    %c0_i32_0 = arith.constant 0 : i32
    %c0_i32_1 = arith.constant 0 : i32
    return %arg0, %c0_i32, %c0_i32_0 : i32, i32, i32
  }
  func.func @transform_3(%arg0: i32) -> (i32, i32) {
    %c0_i32 = arith.constant 0 : i32
    %c0_i32_0 = arith.constant 0 : i32
    %c0_i32_1 = arith.constant 0 : i32
    return %c0_i32, %c0_i32_0 : i32, i32
  }
  func.func @transform_4(%arg0: i32) -> (i32, i32) {
    %c0_i32 = arith.constant 0 : i32
    %c0_i32_0 = arith.constant 0 : i32
    %c0_i32_1 = arith.constant 0 : i32
    return %c0_i32, %c0_i32_0 : i32, i32
  }
  func.func @transform_5(%arg0: i32) -> (i32, i32) {
    %c0_i32 = arith.constant 0 : i32
    %c0_i32_0 = arith.constant 0 : i32
    %c0_i32_1 = arith.constant 0 : i32
    return %c0_i32, %c0_i32_0 : i32, i32
  }
  func.func @transform_6(%arg0: i32) -> (i32, i32, i32) {
    %c0_i32 = arith.constant 0 : i32
    %c0_i32_0 = arith.constant 0 : i32
    %c0_i32_1 = arith.constant 0 : i32
    return %arg0, %c0_i32, %c0_i32_0 : i32, i32, i32
  }
}

</mosaic_0001>

<bundles_post_ra>
// kernel: tpu_custom_call.1
= control target key start
LH: loop header
LB: loop body
LE: loop exit
PB: predicated region body
PF: predicated region fallthrough
CT: control target
= control target key end

     0   :  { %11 = vsyncpa [#allocation3], 0  ;;  %s7371_s0 = inlined_call_operand.vmem [shape: s32[16,8], index: 0, kind: input, shape index: {}]   ;;  %s7372_s1 = inlined_call_operand.vmem [shape: f32[16,128], index: 1, kind: input, shape index: {}]   ;;  %s7373_s2 = inlined_call_operand.hbm [shape: f32[16,8,128], index: 2, kind: input, shape index: {}]   ;;  %s7374_s3 = inlined_call_operand.vmem [shape: f32[8,128], index: 3, kind: input, shape index: {}]   ;;  %s7375_s4 = inlined_call_operand.hbm [shape: f32[2,128], index: 4, kind: input, shape index: {}]   ;;  %s7376_s5 = inlined_call_operand.vmem [shape: f32[6,128], index: 5, kind: input, shape index: {}]   ;;  %s7377_s6 = inlined_call_operand.hbm [shape: f32[16,8,128], index: 6, kind: output, shape index: {}]  }
   0x1   :  { %13 = vsyncpa [#allocation3 + $0x1], 0 }
   0x2   :  { %14 = vsyncpa [#allocation6], 0 }
   0x3   :  { %15 = vsyncpa [#allocation4], 0 }
   0x4   :  { %17 = vsyncpa [#allocation4 + $0x1], 0  ;;  %s6197_s21 = smov 0   ;;  %s6199_s22 = smov 0  }
   0x5   :  { %s6201_s23 = smov 0   ;;  %s6203_s24 = smov 0  }
   0x6 LB: > { %s6218_s25 = sadd.s32 4294967295, %s6151_s24   ;;  %s5355_s26 = sadd.s32 4294967294, %s6151_s24   ;;  %s6151_s24 = sphi %s6203_s24, %s7402_s24   ;;  %s6147_s23 = sphi %s6201_s23, %s7401_s23   ;;  %s6143_s22 = sphi %s6199_s22, %s7400_s22   ;;  %s6139_s21 = sphi %s6197_s21, %s7399_s21  }
   0x7   : > { %s6222_s27 = sadd.s32 1, %s6151_s24   ;;  %s77_s28 = sadd.s32 1, %s6147_s23 }
   0x8   : > { %s74_s29 = ssub.s32 %s6151_s24, %s6222_s27  ;;  %p84_p0 = scmp.ne.s32.totalorder %s6147_s23, %s6143_s22 }
   0x9   : > { %p75_p1 = scmp.eq.s32.totalorder %s74_s29, 0  ;;  %p85_p2 = scmp.eq.s32.totalorder %s6151_s24, 0 }
   0xa   : > { %p90_p3 = scmp.ne.s32.totalorder %s6143_s22, %s6139_s21  ;;  %p7378_p4 = scmp.eq.s32.totalorder %s6218_s25, 0 }
   0xb   : > { %s6234_s30 = scalar_select %p75_p1, %s6147_s23, %s77_s28  }
   0xc   : > { %p6236_p5 = por %p85_p2, %p84_p0  ;;  %p6242_p6 = por %p7378_p4, %p90_p3 }
   0xd   : > { %7382 = sst [smem:[#allocation11_spill]] %s6234_s30  ;;  %p177_p7 = scmp.eq.s32.totalorder %s6218_s25, 1 }
   0xe   : > { %s7384_s8 = scalar_select %p6242_p6, 1, 0 }
   0xf   : > { %p183_p8 = scmp.eq.s32.totalorder %s5355_s26, 1  ;;  %p5356_p9 = scmp.ge.s32.totalorder %s6151_s24, 1 }
  0x10   : > { %p190_p10 = scmp.lt.s32.totalorder %s6151_s24, 3  ;;  %p6249_p11 = por %p177_p7, %p84_p0 }
  0x11   : > { %p6253_p12 = por %p183_p8, %p90_p3  ;;  %s6153_s12 = smov [#allocation5]  }
  0x12   : > { %s7385_s9 = scalar_select %p6249_p11, 1, 0 }
  0x13   : > { %s7386_s10 = scalar_select %p6253_p12, 1, 0 }
  0x14   : > { %p6257_p13 = pnand %p5356_p9, %p190_p10  ;;  %s209_s13 = sshll.u32 %s6153_s12, 4  ;;  %s210_s13 = int_to_ptr.vmem [resolvable:$true] %s209_s13 }
  0x15   : > { %p5955_p4 = scmp.lt.s32.totalorder %s6151_s24, 2  ;;  %p7388_p0 = scmp.eq.s32.totalorder %s6218_s25, 0 }
  0x16   : > { %s7387_s11 = scalar_select %p6257_p13, 1, 0 }
  0x17   : > { %p5942_p2 = pneg %p6257_p13  ;;  %s230_s15 = sand.u32 1, %s6147_s23  }
  0x18   : > { %p6274_p3 = pnand %p5955_p4, %p6236_p5  ;;  %s5359_s17 = sshll.u32 %s230_s15, 6 }
  0x19   : > { %p6267_p7 = pnand %p5942_p2, %p7388_p0  ;;  %s6040_s18 = scalar_lea.vmem %s210_s13, 32 }
  0x1a   : > { %p6041_p9 = scmp.ne.s32.totalorder %s210_s13, %s6040_s18  ;;  %p6048_p12 = scmp.lt.s32.totalorder %s210_s13, %s210_s13 }
  0x1b   : > { %p6031_p8 = pneg %p6267_p7  ;;  %p6049_p11 = scmp.lt.s32.totalorder %s6040_s18, %s6040_s18 }
  0x1d   : > { %p6043_p10 = pnand %p6041_p9, %p6031_p8  ;;  %p6050_p2 = por %p6049_p11, %p6048_p12 }
  0x1f   : > { %p6044_p1 = pneg %p6043_p10 }
  0x21   : > { %p6051_p0 = pnand %p6050_p2, %p6044_p1 }
  0x23   : > { %6054 = shalt.err (!%p6051_p0)
}
  0x24   : > { %5945 = dma.hbm_to_vmem [thread:$0]  (!%p6267_p7), %s7375_s4, 32, %s210_s13, [#allocation6]  }
  0x25   : > { %s5440_s26 = sshll.u32 %s6151_s24, 10  ;;  %s234_s28 = scalar_lea.vmem [#allocation2], %s5359_s17 }
  0x26   : > { %s241_s29 = sshll.u32 %s234_s28, 4  ;;  %s6289_s30 = scalar_lea.hbm %s7373_s2, %s5440_s26  ;;  %s6291_s29 = int_to_ptr.vmem [resolvable:$true] %s241_s29 }
  0x27   : > { %s6293_s14 = scalar_lea.sflag [#allocation3], %s230_s15  ;;  %s6055_s18 = scalar_lea.hbm %s6289_s30, 1024 }
  0x28   : > { %p6056_p4 = scmp.ne.s32.totalorder %s6289_s30, %s6055_s18  ;;  %p6057_p5 = pneg %p6274_p3 }
  0x29   : > { %s6060_s19 = scalar_lea.hbm %s7373_s2, 2048  ;;  %p6061_p1 = scmp.lt.s32.totalorder %s6289_s30, %s7373_s2 }
  0x2a   : > { %p6058_p11 = pnand %p6057_p5, %p6056_p4  ;;  %p6062_p7 = scmp.lt.s32.totalorder %s6060_s19, %s6055_s18 }
  0x2c   : > { %p6059_p12 = pneg %p6058_p11  ;;  %p6063_p8 = por %p6062_p7, %p6061_p1 }
  0x2e   : > { %p6064_p9 = pnand %p6063_p8, %p6059_p12 }
  0x30   : > { %6067 = shalt.err (!%p6064_p9)
}
  0x31   : > { %s6068_s15 = scalar_lea.vmem %s6291_s29, 1024  ;;  %s6154_s28 = smov [#allocation2]  }
  0x32   : > { %p6069_p10 = scmp.ne.s32.totalorder %s6291_s29, %s6068_s15  ;;  %s6073_s7 = sshll.u32 %s6154_s28, 4  ;;  %s6074_s7 = int_to_ptr.vmem [resolvable:$false] %s6073_s7 }
  0x33   : > { %s6075_s12 = scalar_lea.vmem %s6074_s7, 2048  ;;  %p6076_p4 = scmp.lt.s32.totalorder %s6291_s29, %s6074_s7 }
  0x34   : > { %p6071_p2 = pnand %p6069_p10, %p6057_p5  ;;  %p6077_p11 = scmp.lt.s32.totalorder %s6075_s12, %s6068_s15 }
  0x36   : > { %p6072_p0 = pneg %p6071_p2  ;;  %p6078_p6 = por %p6077_p11, %p6076_p4 }
  0x38   : > { %p6079_p13 = pnand %p6078_p6, %p6072_p0 }
  0x3a   : > { %6082 = shalt.err (!%p6079_p13)
}
  0x3b   : > { %s6155_s18 = smov 128   ;;  %s6156_s13 = smov 8  }
  0x3c   : > { %5949 = dma.hbm_to_vmem [thread:$0]  (!%p6274_p3), %s6289_s30, 1024, %s6291_s29, %s6293_s14, %s6155_s18, %s6155_s18, %s6156_s13  }
  0x3d   : > { %p7391_p5 = scmp.ne.s32.totalorder %s7387_s11, 0 }
  0x3e   : > { %s6317_s17 = sand.u32 (!%p7391_p5), 1, %s6143_s22   ;;  %p7392_p6 = scmp.ne.s32.totalorder (!%p7391_p5), %s7384_s8, 0 }
  0x3f   : > { %253 = sbr.rel (%p7391_p5) target bundleno = 876 (0x36c), region = 44  ;;  %s5363_s19 = sshll.u32 (!%p7391_p5), %s6317_s17, 6 }
  0x40   : > { %s256_s20 = scalar_lea.sflag (!%p7391_p5), [#allocation3], %s6317_s17  ;;  %s6323_s26 = scalar_lea.vmem (!%p7391_p5), [#allocation2], %s5363_s19 }
  0x44   : > { %6126 = dma.done.wait (%p7392_p6), %s256_s20, 1024  }
  0x45   : > { %6128 = vsyncadd (%p7392_p6), %s256_s20, 4294966272  ;;  %p7393_p13 = scmp.eq.s32.totalorder %s6218_s25, 0 }
  0x47   : > { %6130 = dma.done.wait (%p7393_p13), [#allocation6], 32   ;;  %p7394_p3 = pmov %p7393_p13 }
  0x48   : > { %p296_p12 = scmp.lt.s32.totalorder %s6218_s25, 1  ;;  %v313_v0 = vlaneseq  ;;  %v304_v7 = vld [vmem:[%s7372_s1 + $0x8] sm:$0xff]  ;;  %v303_v8 = vld [vmem:[%s7372_s1] sm:$0xff]  ;;  %v6157_v40 = vmov 0.0   ;;  %vm395_vm1 = vcmask 130048   ;;  %vm1261_vm11 = vcmask 64512  }
  0x49   : > { %6132 = vsyncadd (%p7394_p3), [#allocation6], 4294967264  ;;  %v6367_v15 = vand.u32 4294901760, %v304_v7  ;;  %v6369_v16 = vand.u32 4294901760, %v303_v8  ;;  %vm6158_vm12 = vmmov 0   ;;  %s7242_s12 = scalar_lea.vmem [#allocation7], %s5363_s19 }
  0x4a   : > { %s297_s30 = scalar_select %p296_p12, %s6218_s25, 1  ;;  %v314_v1 = vshrl.u32 %v313_v0, 7  ;;  %v6431_v48 = vand.u32 127, %v313_v0 }
  0x4b   : > { %5598 = vmatprep.subr.mxu0 %v6367_v15  ;;  %v6373_v17 = vsub.f32 %v304_v7, %v6367_v15  ;;  %v6376_v18 = vsub.f32 %v303_v8, %v6369_v16  ;;  %s5441_s19 = sshll.u32 %s6218_s25, 10  ;;  %s5260_s18 = sshll.u32 %s7242_s12, 4  ;;  %s7327_s18 = int_to_ptr.vmem [resolvable:$true] %s5260_s18 }
  0x4c   : > { %s5366_s11 = sshll.u32 %s297_s30, 3  ;;  %v6336_v2 = vsub.s32 0, %v314_v1  ;;  %v6338_v3 = vsub.s32 2, %v314_v1  ;;  %v6343_v4 = vsub.s32 1, %v314_v1  ;;  %v6345_v5 = vsub.s32 3, %v314_v1  ;;  %5599 = vmatpush3.msra.mxu0 %v6367_v15  ;;  %s5247_s30 = scalar_lea.sflag [#allocation4], %s6317_s17 }
  0x4d   : > { %s299_s29 = scalar_lea.vmem %s7371_s0, %s5366_s11  ;;  %v6359_v11 = vsub.s32 4, %v314_v1  ;;  %v6361_v12 = vsub.s32 5, %v314_v1  ;;  %v6383_v21 = vsub.s32 6, %v314_v1  ;;  %v6385_v22 = vsub.s32 7, %v314_v1  ;;  %5600 = vmatprep.subr.mxu0 %v6369_v16  ;;  %s6083_s11 = scalar_lea.vmem %s7327_s18, 1024 }
  0x4e   : > { %v6347_v6 = vld [vmem:[%s299_s29] sm:$0xff]  ;;  %v6388_v23 = vand.u32 4294901760, %v6373_v17  ;;  %v6391_v24 = vand.u32 4294901760, %v6376_v18  ;;  %5601 = vmatpush3.msra.mxu0 %v6369_v16  ;;  %p6084_p1 = scmp.ne.s32.totalorder %s7327_s18, %s6083_s11  ;;  %p7395_p7 = scmp.ne.s32.totalorder %s7385_s9, 0 }
  0x4f   : > { %v316_v9 = vrot.slane %v6347_v6, %v6336_v2  ;;  %v330_v10 = vrot.slane %v6347_v6, %v6338_v3  ;;  %v323_v13 = vrot.slane %v6347_v6, %v6343_v4  ;;  %v337_v14 = vrot.slane %v6347_v6, %v6345_v5  ;;  %5630 = vmatprep.subr.mxu0 %v6373_v17  ;;  %s6159_s25 = smov [#allocation7]  }
  0x50   : > { %v344_v19 = vrot.slane %v6347_v6, %v6359_v11  ;;  %v351_v20 = vrot.slane %v6347_v6, %v6361_v12  ;;  %v599_v25 = vsub.f32 %v6373_v17, %v6388_v23  ;;  %v606_v26 = vsub.f32 %v6376_v18, %v6391_v24  ;;  %p6085_p8 = pnand %p6084_p1, %p7395_p7  ;;  %s6087_s8 = sshll.u32 %s6159_s25, 4  ;;  %s6088_s8 = int_to_ptr.vmem [resolvable:$false] %s6087_s8 }
  0x51   : > { %318 = vbcast.lane.b32.xlu0 %v316_v9, 256  ;;  %332 = vbcast.lane.b32.xlu1 %v330_v10, 256  ;;  %v358_v27 = vrot.slane %v6347_v6, %v6383_v21  ;;  %v365_v28 = vrot.slane %v6347_v6, %v6385_v22  ;;  %v5399_v29 = vadd.s32 4294967280, %v6347_v6  ;;  %vm4862_vm0 = vcmp.ge.s32.totalorder %v6347_v6, 16  ;;  %s6089_s16 = scalar_lea.vmem %s6088_s8, 2048  ;;  %p6090_p10 = scmp.lt.s32.totalorder %s7327_s18, %s6088_s8 }
  0x52   : > { %v600_v30 = vand.u32 4294901760, %v599_v25  ;;  %v607_v31 = vand.u32 4294901760, %v606_v26  ;;  %v6416_v41 = vsel %vm4862_vm0, 1.0, %v6157_v40  ;;  %p6086_p9 = pneg %p6085_p8  ;;  %p6091_p2 = scmp.lt.s32.totalorder %s6089_s16, %s6083_s11 }
  0x53   : > { %v1184_v32 = vrot.slane %v5399_v29, %v6336_v2  ;;  %v1191_v33 = vrot.slane %v5399_v29, %v6343_v4  ;;  %v1198_v34 = vrot.slane %v5399_v29, %v6338_v3  ;;  %v1205_v35 = vrot.slane %v5399_v29, %v6345_v5 }
  0x54   : > { %5614 = vmatprep.subr.mxu1 %v600_v30  ;;  %v1212_v36 = vrot.slane %v5399_v29, %v6359_v11  ;;  %v1219_v37 = vrot.slane %v5399_v29, %v6361_v12  ;;  %v1226_v38 = vrot.slane %v5399_v29, %v6383_v21  ;;  %v1233_v39 = vrot.slane %v5399_v29, %v6385_v22  ;;  %p6092_p0 = por %p6091_p2, %p6090_p10 }
  0x55   : > { %325 = vbcast.lane.b32.xlu0 %v323_v13, 256  ;;  %339 = vbcast.lane.b32.xlu1 %v337_v14, 256  ;;  %v4875_v42 = vrot.slane %v6416_v41, %v6343_v4  ;;  %v4889_v43 = vrot.slane %v6416_v41, %v6345_v5  ;;  %v4868_v44 = vrot.slane %v6416_v41, %v6336_v2 }
  0x56   : > { %5615 = vmatpush3.msra.mxu1 %v600_v30  ;;  %v4903_v45 = vrot.slane %v6416_v41, %v6361_v12  ;;  %v4882_v46 = vrot.slane %v6416_v41, %v6338_v3  ;;  %v4896_v47 = vrot.slane %v6416_v41, %v6359_v11  ;;  %p6093_p4 = pnand %p6092_p0, %p6086_p9 }
  0x57   : > { %5616 = vmatprep.subr.mxu1 %v607_v31 }
  0x58   : > { %5617 = vmatpush3.msra.mxu1 %v607_v31 }
  0x59   : > { %346 = vbcast.lane.b32.xlu0 %v344_v19, 256  ;;  %353 = vbcast.lane.b32.xlu1 %v351_v20, 256 }
  0x5a   : > { %5646 = vmatprep.subr.mxu1 %v6367_v15 }
  0x5d   : > { %360 = vbcast.lane.b32.xlu0 %v358_v27, 256  ;;  %367 = vbcast.lane.b32.xlu1 %v365_v28, 256 }
  0x61   : > { %1186 = vbcast.lane.b32.xlu0 %v1184_v32, 256  ;;  %1193 = vbcast.lane.b32.xlu1 %v1191_v33, 256 }
  0x65   : > { %1200 = vbcast.lane.b32.xlu0 %v1198_v34, 256  ;;  %1207 = vbcast.lane.b32.xlu1 %v1205_v35, 256 }
  0x69   : > { %1214 = vbcast.lane.b32.xlu0 %v1212_v36, 256  ;;  %1221 = vbcast.lane.b32.xlu1 %v1219_v37, 256 }
  0x6d   : > { %1228 = vbcast.lane.b32.xlu0 %v1226_v38, 256  ;;  %1235 = vbcast.lane.b32.xlu1 %v1233_v39, 256 }
  0x71   : > { %4877 = vbcast.lane.b32.xlu1 %v4875_v42, 256  ;;  %4870 = vbcast.lane.b32.xlu0 %v4868_v44, 256 }
  0x75   : > { %4891 = vbcast.lane.b32.xlu1 %v4889_v43, 256  ;;  %4884 = vbcast.lane.b32.xlu0 %v4882_v46, 256 }
  0x79   : > { %4905 = vbcast.lane.b32.xlu1 %v4903_v45, 256  ;;  %4898 = vbcast.lane.b32.xlu0 %v4896_v47, 256  ;;  %v305_v47 = vld [vmem:[%s6323_s26] sm:$0xff] }
  0xc3   : > { %v319_v49 = vpop.permute.xlu0 %318  ;;  %v333_v50 = vpop.permute.xlu1 %332 }
  0xc4   : > { %vm371_vm2 = vcmp.eq.s32.totalorder %v319_v49, %v6431_v48  ;;  %vm373_vm3 = vcmp.eq.s32.totalorder %v333_v50, %v6431_v48 }
  0xc5   : > { %v6436_v51 = vsel %vm371_vm2, 1.0, %v6157_v40  ;;  %v6439_v52 = vsel %vm373_vm3, 1.0, %v6157_v40 }
  0xc6   : > { %v403_v53 = vsel %vm395_vm1, %v6439_v52, 0  ;;  %5618 = vmatprep.mubr.msk.f32.mxu1 %vm395_vm1, %v6436_v51  ;;  %v397_v54 = vsel %vm395_vm1, %v6436_v51, 0 }
  0xc7   : > { %v6447_v55 = vsub.f32 %v403_v53, %v403_v53  ;;  %v326_v56 = vpop.permute.xlu0 %325  ;;  %v340_v57 = vpop.permute.xlu1 %339  ;;  %v6449_v58 = vsub.f32 %v397_v54, %v397_v54 }
  0xc8   : > { %vm372_vm4 = vcmp.eq.s32.totalorder %v326_v56, %v6431_v48  ;;  %vm374_vm5 = vcmp.eq.s32.totalorder %v340_v57, %v6431_v48  ;;  %v4917_v57 = vrot.slane %v6416_v41, %v6385_v22 }
  0xc9   : > { %v6454_v59 = vsel %vm372_vm4, 1.0, %v6157_v40  ;;  %v6457_v60 = vsel %vm374_vm5, 1.0, %v6157_v40  ;;  %v489_v61 = vand.u32 4294901760, %v6449_v58  ;;  %v509_v0 = vand.u32 4294901760, %v6447_v55 }
  0xca   : > { %v400_v62 = vsel %vm395_vm1, %v6454_v59, 0  ;;  %v406_v63 = vsel %vm395_vm1, %v6457_v60, 0  ;;  %5619 = vmatmul.mubr.msk.f32.vlgmr.msra.gmra.mxu1 %vm395_vm1, %v6454_v59  ;;  %4919 = vbcast.lane.b32.xlu1 %v4917_v57, 256 }
  0xcb   : > { %v6467_v1 = vsub.f32 %v400_v62, %v400_v62  ;;  %v6469_v3 = vsub.f32 %v406_v63, %v406_v63  ;;  %5621 = vmatprep.mubr.msk.f32.mxu1 %vm395_vm1, %v6439_v52  ;;  %v347_v4 = vpop.permute.xlu0 %346  ;;  %v354_v5 = vpop.permute.xlu1 %353  ;;  %v490_v6 = vsub.f32 %v6449_v58, %v489_v61  ;;  %5647 = vmatpush3.msra.mxu1 %v6367_v15 }
  0xcc   : > { %vm375_vm6 = vcmp.eq.s32.totalorder %v347_v4, %v6431_v48  ;;  %vm376_vm7 = vcmp.eq.s32.totalorder %v354_v5, %v6431_v48  ;;  %5648 = vmatprep.subr.mxu1 %v6369_v16  ;;  %v510_v13 = vsub.f32 %v6447_v55, %v509_v0 }
  0xcd   : > { %v6478_v7 = vsel %vm375_vm6, 1.0, %v6157_v40  ;;  %v6481_v8 = vsel %vm376_vm7, 1.0, %v6157_v40  ;;  %v491_v9 = vand.u32 4294901760, %v490_v6  ;;  %v499_v10 = vand.u32 4294901760, %v6467_v1  ;;  %5649 = vmatpush3.msra.mxu1 %v6369_v16 }
  0xce   : > { %v409_v11 = vsel %vm395_vm1, %v6478_v7, 0  ;;  %v412_v12 = vsel %vm395_vm1, %v6481_v8, 0  ;;  %5622 = vmatmul.mubr.msk.f32.gmra.mxu1 %vm395_vm1, %v6457_v60  ;;  %v519_v14 = vand.u32 4294901760, %v6469_v3  ;;  %5678 = vmatprep.subr.mxu1 %v6367_v15  ;;  %v511_v35 = vand.u32 4294901760, %v510_v13 }
  0xcf   : > { %v6495_v19 = vsub.f32 %v409_v11, %v409_v11  ;;  %v6497_v20 = vsub.f32 %v412_v12, %v412_v12  ;;  %5602 = vmatprep.mubr.f32.mxu0 %v491_v9  ;;  %v361_v25 = vpop.permute.xlu0 %360  ;;  %v368_v26 = vpop.permute.xlu1 %367  ;;  %5624 = vmatprep.mubr.msk.f32.mxu1 %vm395_vm1, %v6478_v7  ;;  %v500_v27 = vsub.f32 %v6467_v1, %v499_v10  ;;  %v308_v11 = vld [vmem:[%s6323_s26 + $0x18] sm:$0xff] }
  0xd0   : > { %vm377_vm8 = vcmp.eq.s32.totalorder %v361_v25, %v6431_v48  ;;  %vm378_vm9 = vcmp.eq.s32.totalorder %v368_v26, %v6431_v48  ;;  %v520_v28 = vsub.f32 %v6469_v3, %v519_v14 }
  0xd1   : > { %v6507_v29 = vsel %vm377_vm8, 1.0, %v6157_v40  ;;  %v6510_v30 = vsel %vm378_vm9, 1.0, %v6157_v40  ;;  %v501_v31 = vand.u32 4294901760, %v500_v27  ;;  %v529_v32 = vand.u32 4294901760, %v6495_v19 }
  0xd2   : > { %v415_v33 = vsel %vm395_vm1, %v6507_v29, 0  ;;  %v418_v34 = vsel %vm395_vm1, %v6510_v30, 0  ;;  %5625 = vmatmul.mubr.msk.f32.gmra.mxu1 %vm395_vm1, %v6481_v8  ;;  %v539_v36 = vand.u32 4294901760, %v6497_v20  ;;  %v521_v42 = vand.u32 4294901760, %v520_v28 }
  0xd3   : > { %v548_v37 = vsub.f32 %v415_v33, %v415_v33  ;;  %v6521_v38 = vsub.f32 %v418_v34, %v418_v34  ;;  %5603 = vmatmul.mubr.f32.vlgmr.msra.gmra.mxu0 %v501_v31  ;;  %5627 = vmatprep.mubr.msk.f32.mxu1 %vm395_vm1, %v6507_v29  ;;  %v530_v39 = vsub.f32 %v6495_v19, %v529_v32  ;;  %v1187_v22 = vpop.permute.xlu0 %1186  ;;  %v1194_v62 = vpop.permute.xlu1 %1193 }
  0xd4   : > { %5631 = vmatpush3.msra.mxu0 %v6373_v17  ;;  %5605 = vmatprep.mubr.f32.mxu0 %v511_v35  ;;  %v540_v44 = vsub.f32 %v6497_v20, %v539_v36  ;;  %v6535_v17 = vand.u32 4294901760, %v305_v47  ;;  %vm1237_vm10 = vcmp.eq.s32.totalorder %v1187_v22, %v6431_v48  ;;  %vm1238_vm13 = vcmp.eq.s32.totalorder %v1194_v62, %v6431_v48  ;;  %v311_v22 = vld [vmem:[%s6323_s26 + $0x30] sm:$0xff] }
  0xd5   : > { %v531_v43 = vand.u32 4294901760, %v530_v39  ;;  %5632 = vmatprep.subr.mxu0 %v6376_v18  ;;  %v549_v45 = vand.u32 4294901760, %v548_v37  ;;  %v559_v46 = vand.u32 4294901760, %v6521_v38 }
  0xd6   : > { %5628 = vmatmul.mubr.msk.f32.gmra.mxu1 %vm395_vm1, %v6510_v30  ;;  %5633 = vmatpush3.msra.mxu0 %v6376_v18  ;;  %v541_v50 = vand.u32 4294901760, %v540_v44  ;;  %v6542_v18 = vsub.f32 %v305_v47, %v6535_v17  ;;  %v310_v47 = vld [vmem:[%s6323_s26 + $0x28] sm:$0xff] }
  0xd7   : > { %5606 = vmatmul.mubr.f32.gmra.mxu0 %v521_v42  ;;  %5650 = vmatprep.mubr.f32.mxu1 %v489_v61  ;;  %v550_v49 = vsub.f32 %v548_v37, %v549_v45  ;;  %v560_v54 = vsub.f32 %v6521_v38, %v559_v46  ;;  %v1201_v9 = vpop.permute.xlu0 %1200 }
  0xd8   : > { %5608 = vmatprep.mubr.f32.mxu0 %v531_v43  ;;  %5662 = vmatprep.subr.mxu0 %v6388_v23  ;;  %v1374_v61 = vand.u32 4294901760, %v6542_v18  ;;  %vm1239_vm14 = vcmp.eq.s32.totalorder %v1201_v9, %v6431_v48 }
  0xd9   : > { %v551_v53 = vand.u32 4294901760, %v550_v49  ;;  %v561_v56 = vand.u32 4294901760, %v560_v54  ;;  %v6659_v13 = vsel %vm1239_vm14, 1.0, %v6157_v40 }
  0xda   : > { %5651 = vmatmul.mubr.f32.vlgmr.msra.gmra.mxu1 %v499_v10  ;;  %v2161_v25 = vsel %vm1261_vm11, %v6659_v13, 0 }
  0xdb   : > { %5609 = vmatmul.mubr.f32.gmra.mxu0 %v541_v50  ;;  %5653 = vmatprep.mubr.f32.mxu1 %v509_v0  ;;  %v2230_v28 = vsub.f32 %v2161_v25, %v2161_v25 }
  0xdc   : > { %5611 = vmatprep.mubr.f32.mxu0 %v551_v53  ;;  %5679 = vmatpush3.msra.mxu1 %v6367_v15  ;;  %v4910_v15 = vrot.slane %v6416_v41, %v6383_v21  ;;  %v6756_v53 = vand.u32 4294901760, %v310_v47 }
  0xdd   : > { %5680 = vmatprep.subr.mxu1 %v6369_v16  ;;  %v2231_v33 = vand.u32 4294901760, %v2230_v28 }
  0xde   : > { %5654 = vmatmul.mubr.f32.gmra.mxu1 %v519_v14  ;;  %4912 = vbcast.lane.b32.xlu0 %v4910_v15, 256  ;;  %v6772_v57 = vsub.f32 %v310_v47, %v6756_v53 }
  0xdf   : > { %5612 = vmatmul.mubr.f32.gmra.mxu0 %v561_v56  ;;  %5656 = vmatprep.mubr.f32.mxu1 %v529_v32  ;;  %v309_v32 = vld [vmem:[%s6323_s26 + $0x20] sm:$0xff] }
  0xe0   : > { %5634 = vmatprep.mubr.f32.mxu0 %v6449_v58  ;;  %5681 = vmatpush3.msra.mxu1 %v6369_v16  ;;  %v1375_v16 = vsub.f32 %v6542_v18, %v1374_v61 }
  0xe1   : > { %5699 = vmatprep.subr.mxu1 %v6157_v40 }
  0xe2   : > { %5657 = vmatmul.mubr.f32.gmra.mxu1 %v539_v36  ;;  %v1376_v21 = vand.u32 4294901760, %v1375_v16  ;;  %v6710_v36 = vand.u32 4294901760, %v309_v32 }
  0xe3   : > { %5635 = vmatmul.mubr.f32.vlgmr.msra.gmra.mxu0 %v6467_v1  ;;  %5659 = vmatprep.mubr.f32.mxu1 %v549_v45  ;;  %v1215_v45 = vpop.permute.xlu0 %1214 }
  0xe4   : > { %5663 = vmatpush3.msra.mxu0 %v6388_v23  ;;  %5637 = vmatprep.mubr.f32.mxu0 %v6447_v55  ;;  %v306_v23 = vld [vmem:[%s6323_s26 + $0x8] sm:$0xff]  ;;  %v6726_v42 = vsub.f32 %v309_v32, %v6710_v36  ;;  %vm1241_vm0 = vcmp.eq.s32.totalorder %v1215_v45, %v6431_v48 }
  0xe5   : > { %5664 = vmatprep.subr.mxu0 %v6391_v24  ;;  %v6582_v41 = vand.u32 4294901760, %v306_v23 }
  0xe6   : > { %5660 = vmatmul.mubr.f32.gmra.mxu1 %v559_v46  ;;  %5665 = vmatpush3.msra.mxu0 %v6391_v24  ;;  %v6580_v24 = vsel %vm1237_vm10, 1.0, %v6157_v40  ;;  %v3170_v46 = vand.u32 4294901760, %v6726_v42 }
  0xe7   : > { %5638 = vmatmul.mubr.f32.gmra.mxu0 %v6469_v3  ;;  %5682 = vmatprep.mubr.msk.f32.mxu1 %vm395_vm1, %v6436_v51  ;;  %v1263_v55 = vsel %vm1261_vm11, %v6580_v24, 0  ;;  %v6595_v58 = vsub.f32 %v306_v23, %v6582_v41 }
  0xe8   : > { %5640 = vmatprep.mubr.f32.mxu0 %v6495_v19  ;;  %5694 = vmatprep.subr.mxu0 %v6157_v40  ;;  %v6664_v19 = vand.u32 4294901760, %v308_v11  ;;  %v3171_v50 = vsub.f32 %v6726_v42, %v3170_v46 }
  0xea   : > { %5683 = vmatmul.mubr.msk.f32.vlgmr.msra.gmra.mxu1 %vm395_vm1, %v6454_v59  ;;  %v6680_v27 = vsub.f32 %v308_v11, %v6664_v19  ;;  %v3172_v56 = vand.u32 4294901760, %v3171_v50 }
  0xeb   : > { %5641 = vmatmul.mubr.f32.gmra.mxu0 %v6497_v20  ;;  %5685 = vmatprep.mubr.msk.f32.mxu1 %vm395_vm1, %v6439_v52 }
  0xec   : > { %5643 = vmatprep.mubr.f32.mxu0 %v548_v37  ;;  %5700 = vmatpush3.msra.mxu1 %v1376_v21  ;;  %v2721_v31 = vand.u32 4294901760, %v6680_v27  ;;  %v2232_v37 = vsub.f32 %v2230_v28, %v2231_v33  ;;  %v3619_v21 = vand.u32 4294901760, %v6772_v57 }
  0xed   : > { %5709 = vmatprep.subr.mxu1 %v6157_v40 }
  0xee   : > { %5686 = vmatmul.mubr.msk.f32.gmra.mxu1 %vm395_vm1, %v6457_v60  ;;  %v2722_v35 = vsub.f32 %v6680_v27, %v2721_v31  ;;  %v2233_v44 = vand.u32 4294901760, %v2232_v37 }
  0xef   : > { %5644 = vmatmul.mubr.f32.gmra.mxu0 %v6521_v38  ;;  %5688 = vmatprep.mubr.msk.f32.mxu1 %vm395_vm1, %v6478_v7 }
  0xf0   : > { %5666 = vmatprep.mubr.msk.f32.mxu0 %vm395_vm1, %v6436_v51  ;;  %v1332_v51 = vsub.f32 %v1263_v55, %v1263_v55  ;;  %v2723_v39 = vand.u32 4294901760, %v2722_v35  ;;  %v6802_v55 = vand.u32 4294901760, %v311_v22 }
  0xf2   : > { %5689 = vmatmul.mubr.msk.f32.gmra.mxu1 %vm395_vm1, %v6481_v8  ;;  %v1333_v63 = vand.u32 4294901760, %v1332_v51 }
  0xf3   : > { %5667 = vmatmul.mubr.msk.f32.vlgmr.msra.gmra.mxu0 %vm395_vm1, %v6454_v59  ;;  %5691 = vmatprep.mubr.msk.f32.mxu1 %vm395_vm1, %v6507_v29  ;;  %v1823_v59 = vand.u32 4294901760, %v6595_v58 }
  0xf4   : > { %5695 = vmatpush3.msra.mxu0 %v6535_v17  ;;  %5669 = vmatprep.mubr.msk.f32.mxu0 %vm395_vm1, %v6439_v52  ;;  %v307_v52 = vld [vmem:[%s6323_s26 + $0x10] sm:$0xff]  ;;  %v1334_v3 = vsub.f32 %v1332_v51, %v1333_v63 }
  0xf5   : > { %5704 = vmatprep.subr.mxu0 %v6157_v40  ;;  %v1824_v0 = vsub.f32 %v6595_v58, %v1823_v59  ;;  %v6623_v1 = vand.u32 4294901760, %v307_v52 }
  0xf6   : > { %5692 = vmatmul.mubr.msk.f32.gmra.mxu1 %vm395_vm1, %v6510_v30 }
  0xf7   : > { %5670 = vmatmul.mubr.msk.f32.gmra.mxu0 %vm395_vm1, %v6457_v60  ;;  %5701 = vmatprep.mubr.msk.f32.mxu1 %vm6158_vm12, %v6157_v40  ;;  %v6618_v60 = vsel %vm1238_vm13, 1.0, %v6157_v40  ;;  %v1825_v5 = vand.u32 4294901760, %v1824_v0  ;;  %v6636_v6 = vsub.f32 %v307_v52, %v6623_v1 }
  0xf8   : > { %5672 = vmatprep.mubr.msk.f32.mxu0 %vm395_vm1, %v6478_v7  ;;  %v1712_v4 = vsel %vm1261_vm11, %v6618_v60, 0  ;;  %v1335_v7 = vand.u32 4294901760, %v1334_v3 }
  0xf9   : > { %v2272_v10 = vand.u32 4294901760, %v6636_v6 }
  0xfa   : > { %5702 = vmatmul.mubr.msk.f32.vlgmr.msra.gmra.mxu1 %vm1261_vm11, %v6580_v24 }
  0xfb   : > { %5673 = vmatmul.mubr.msk.f32.gmra.mxu0 %vm395_vm1, %v6481_v8  ;;  %5710 = vmatpush3.msra.mxu1 %v6535_v17  ;;  %v1781_v8 = vsub.f32 %v1712_v4, %v1712_v4  ;;  %v2273_v14 = vsub.f32 %v6636_v6, %v2272_v10 }
  0xfc   : > { %5675 = vmatprep.mubr.msk.f32.mxu0 %vm395_vm1, %v6507_v29  ;;  %5711 = vmatprep.mubr.msk.f32.mxu1 %vm6158_vm12, %v6157_v40 }
  0xfd   : > { %5719 = vmatprep.subr.mxu1 %v6157_v40  ;;  %v1782_v12 = vand.u32 4294901760, %v1781_v8  ;;  %v2274_v26 = vand.u32 4294901760, %v2273_v14 }
  0xfe   : > { %5712 = vmatmul.mubr.f32.vlgmr.msra.gmra.mxu1 %v1333_v63 }
  0xff   : > { %5676 = vmatmul.mubr.msk.f32.gmra.mxu0 %vm395_vm1, %v6510_v30  ;;  %5720 = vmatpush3.msra.mxu1 %v6535_v17  ;;  %v1783_v20 = vsub.f32 %v1781_v8, %v1782_v12  ;;  %v1208_v30 = vpop.permute.xlu1 %1207  ;;  %v6751_v17 = vsel %vm1241_vm0, 1.0, %v6157_v40 }
 0x100   : > { %5721 = vmatprep.mubr.msk.f32.mxu1 %vm6158_vm12, %v6157_v40  ;;  %5696 = vmatprep.mubr.msk.f32.mxu0 %vm6158_vm12, %v6157_v40  ;;  %vm1240_vm15 = vcmp.eq.s32.totalorder %v1208_v30, %v6431_v48 }
 0x101   : > { %5729 = vmatprep.subr.mxu1 %v6157_v40  ;;  %v1784_v29 = vand.u32 4294901760, %v1783_v20  ;;  %v6705_v34 = vsel %vm1240_vm15, 1.0, %v6157_v40  ;;  %v5083_v20 = vld [vmem:[#allocation5 + $0x1] sm:$0x1] }
 0x102   : > { %5722 = vmatmul.mubr.msk.f32.vlgmr.msra.gmra.mxu1 %vm1261_vm11, %v6580_v24  ;;  %v2610_v38 = vsel %vm1261_vm11, %v6705_v34, 0 }
 0x103   : > { %5697 = vmatmul.mubr.f32.vlgmr.msra.gmra.mxu0 %v1335_v7  ;;  %5730 = vmatpush3.msra.mxu1 %v1825_v5  ;;  %v2679_v43 = vsub.f32 %v2610_v38, %v2610_v38  ;;  %v1222_v16 = vpop.permute.xlu1 %1221 }
 0x104   : > { %5705 = vmatpush3.msra.mxu0 %v6542_v18  ;;  %5731 = vmatprep.mubr.msk.f32.mxu1 %vm6158_vm12, %v6157_v40  ;;  %v3059_v18 = vsel %vm1261_vm11, %v6751_v17, 0  ;;  %vm1242_vm1 = vcmp.eq.s32.totalorder %v1222_v16, %v6431_v48 }
 0x105   : > { %5706 = vmatprep.mubr.msk.f32.mxu0 %vm6158_vm12, %v6157_v40  ;;  %5714 = vmatprep.subr.mxu0 %v6157_v40  ;;  %v2680_v49 = vand.u32 4294901760, %v2679_v43 }
 0x106   : > { %5732 = vmatmul.mubr.msk.f32.vlgmr.msra.gmra.mxu1 %vm1261_vm11, %v6618_v60  ;;  %5739 = vmatprep.subr.mxu1 %v6157_v40 }
 0x107   : > { %5707 = vmatmul.mubr.f32.vlgmr.msra.gmra.mxu0 %v1332_v51  ;;  %5740 = vmatpush3.msra.mxu1 %v6582_v41  ;;  %v2681_v54 = vsub.f32 %v2679_v43, %v2680_v49 }
 0x108   : > { %5715 = vmatpush3.msra.mxu0 %v1374_v61  ;;  %5741 = vmatprep.mubr.msk.f32.mxu1 %vm6158_vm12, %v6157_v40  ;;  %v3128_v61 = vsub.f32 %v3059_v18, %v3059_v18 }
 0x109   : > { %5716 = vmatprep.mubr.msk.f32.mxu0 %vm6158_vm12, %v6157_v40  ;;  %5724 = vmatprep.subr.mxu0 %v6157_v40  ;;  %v2682_v15 = vand.u32 4294901760, %v2681_v54 }
 0x10a   : > { %5742 = vmatmul.mubr.f32.vlgmr.msra.gmra.mxu1 %v1782_v12  ;;  %5749 = vmatprep.subr.mxu1 %v6157_v40  ;;  %v3129_v23 = vand.u32 4294901760, %v3128_v61 }
 0x10b   : > { %5717 = vmatmul.mubr.msk.f32.vlgmr.msra.gmra.mxu0 %vm1261_vm11, %v6580_v24  ;;  %5750 = vmatpush3.msra.mxu1 %v6582_v41  ;;  %v6797_v24 = vsel %vm1242_vm1, 1.0, %v6157_v40 }
 0x10c   : > { %5725 = vmatpush3.msra.mxu0 %v6582_v41  ;;  %5751 = vmatprep.mubr.msk.f32.mxu1 %vm6158_vm12, %v6157_v40  ;;  %v3620_v41 = vsub.f32 %v6772_v57, %v3619_v21  ;;  %v3508_v51 = vsel %vm1261_vm11, %v6797_v24, 0 }
 0x10d   : > { %5726 = vmatprep.mubr.msk.f32.mxu0 %vm6158_vm12, %v6157_v40  ;;  %5734 = vmatprep.subr.mxu0 %v6157_v40  ;;  %v3577_v52 = vsub.f32 %v3508_v51, %v3508_v51 }
 0x10e   : > { %5752 = vmatmul.mubr.msk.f32.vlgmr.msra.gmra.mxu1 %vm1261_vm11, %v6618_v60  ;;  %5759 = vmatprep.subr.mxu1 %v6157_v40  ;;  %v3621_v62 = vand.u32 4294901760, %v3620_v41 }
 0x10f   : > { %5727 = vmatmul.mubr.f32.vlgmr.msra.gmra.mxu0 %v1784_v29  ;;  %5760 = vmatpush3.msra.mxu1 %v2274_v26  ;;  %v3578_v3 = vand.u32 4294901760, %v3577_v52 }
 0x110   : > { %5735 = vmatpush3.msra.mxu0 %v6595_v58  ;;  %5761 = vmatprep.mubr.msk.f32.mxu1 %vm6158_vm12, %v6157_v40  ;;  %v3130_v58 = vsub.f32 %v3128_v61, %v3129_v23 }
 0x111   : > { %5736 = vmatprep.mubr.msk.f32.mxu0 %vm6158_vm12, %v6157_v40  ;;  %5744 = vmatprep.subr.mxu0 %v6157_v40  ;;  %v3579_v7 = vsub.f32 %v3577_v52, %v3578_v3 }
 0x112   : > { %5762 = vmatmul.mubr.msk.f32.vlgmr.msra.gmra.mxu1 %vm1261_vm11, %v6659_v13  ;;  %5769 = vmatprep.subr.mxu1 %v6157_v40  ;;  %v3131_v63 = vand.u32 4294901760, %v3130_v58 }
 0x113   : > { %5737 = vmatmul.mubr.f32.vlgmr.msra.gmra.mxu0 %v1781_v8  ;;  %5770 = vmatpush3.msra.mxu1 %v6623_v1  ;;  %v3580_v12 = vand.u32 4294901760, %v3579_v7 }
 0x114   : > { %5745 = vmatpush3.msra.mxu0 %v1823_v59  ;;  %5771 = vmatprep.mubr.msk.f32.mxu1 %vm6158_vm12, %v6157_v40  ;;  %v6818_v59 = vsub.f32 %v311_v22, %v6802_v55 }
 0x115   : > { %5746 = vmatprep.mubr.msk.f32.mxu0 %vm6158_vm12, %v6157_v40  ;;  %5754 = vmatprep.subr.mxu0 %v6157_v40 }
 0x116   : > { %5772 = vmatmul.mubr.f32.vlgmr.msra.gmra.mxu1 %v2231_v33  ;;  %5779 = vmatprep.subr.mxu1 %v6157_v40  ;;  %v4068_v0 = vand.u32 4294901760, %v6818_v59 }
 0x117   : > { %5747 = vmatmul.mubr.msk.f32.vlgmr.msra.gmra.mxu0 %vm1261_vm11, %v6618_v60  ;;  %5780 = vmatpush3.msra.mxu1 %v6623_v1  ;;  %v1229_v60 = vpop.permute.xlu0 %1228 }
 0x118   : > { %5755 = vmatpush3.msra.mxu0 %v6623_v1  ;;  %5781 = vmatprep.mubr.msk.f32.mxu1 %vm6158_vm12, %v6157_v40  ;;  %vm1243_vm2 = vcmp.eq.s32.totalorder %v1229_v60, %v6431_v48  ;;  %v312_v1 = vld [vmem:[%s6323_s26 + $0x38] sm:$0xff]  ;;  %v4069_v5 = vsub.f32 %v6818_v59, %v4068_v0  ;;  %s7325_s26 = scalar_lea.hbm %s7377_s6, %s5441_s19 }
 0x119   : > { %5756 = vmatprep.mubr.msk.f32.mxu0 %vm6158_vm12, %v6157_v40  ;;  %5764 = vmatprep.subr.mxu0 %v6157_v40  ;;  %v6843_v4 = vsel %vm1243_vm2, 1.0, %v6157_v40 }
 0x11a   : > { %5782 = vmatmul.mubr.msk.f32.vlgmr.msra.gmra.mxu1 %vm1261_vm11, %v6659_v13  ;;  %5789 = vmatprep.subr.mxu1 %v6157_v40  ;;  %v3957_v8 = vsel %vm1261_vm11, %v6843_v4, 0  ;;  %v4070_v9 = vand.u32 4294901760, %v4069_v5 }
 0x11b   : > { %5757 = vmatmul.mubr.f32.vlgmr.msra.gmra.mxu0 %v2233_v44  ;;  %5790 = vmatpush3.msra.mxu1 %v2723_v39  ;;  %v6869_v11 = vsub.f32 %v3957_v8, %v3957_v8  ;;  %v6902_v29 = vpop.permute.xlu0 %4870 }
 0x11c   : > { %5765 = vmatpush3.msra.mxu0 %v6636_v6  ;;  %5791 = vmatprep.mubr.msk.f32.mxu1 %vm6158_vm12, %v6157_v40  ;;  %v6848_v6 = vand.u32 4294901760, %v312_v1 }
 0x11d   : > { %5766 = vmatprep.mubr.msk.f32.mxu0 %vm6158_vm12, %v6157_v40  ;;  %5774 = vmatprep.subr.mxu0 %v6157_v40  ;;  %v4027_v25 = vand.u32 4294901760, %v6869_v11 }
 0x11e   : > { %5792 = vmatmul.mubr.msk.f32.vlgmr.msra.gmra.mxu1 %vm1261_vm11, %v6705_v34  ;;  %5799 = vmatprep.subr.mxu1 %v6157_v40 }
 0x11f   : > { %5767 = vmatmul.mubr.f32.vlgmr.msra.gmra.mxu0 %v2230_v28  ;;  %5800 = vmatpush3.msra.mxu1 %v6664_v19  ;;  %v4028_v30 = vsub.f32 %v6869_v11, %v4027_v25  ;;  %v6933_v39 = vpop.permute.xlu0 %4884 }
 0x120   : > { %5775 = vmatpush3.msra.mxu0 %v2272_v10  ;;  %5801 = vmatprep.mubr.msk.f32.mxu1 %vm6158_vm12, %v6157_v40  ;;  %v6864_v10 = vsub.f32 %v312_v1, %v6848_v6 }
 0x121   : > { %5776 = vmatprep.mubr.msk.f32.mxu0 %vm6158_vm12, %v6157_v40  ;;  %5784 = vmatprep.subr.mxu0 %v6157_v40  ;;  %v4029_v35 = vand.u32 4294901760, %v4028_v30 }
 0x122   : > { %5802 = vmatmul.mubr.f32.vlgmr.msra.gmra.mxu1 %v2680_v49  ;;  %5809 = vmatprep.subr.mxu1 %v6157_v40  ;;  %v4517_v14 = vand.u32 4294901760, %v6864_v10 }
 0x123   : > { %5777 = vmatmul.mubr.msk.f32.vlgmr.msra.gmra.mxu0 %vm1261_vm11, %v6659_v13  ;;  %5810 = vmatpush3.msra.mxu1 %v6664_v19  ;;  %v1236_v13 = vpop.permute.xlu1 %1235  ;;  %v6965_v50 = vpop.permute.xlu0 %4898 }
 0x124   : > { %5785 = vmatpush3.msra.mxu0 %v6664_v19  ;;  %5811 = vmatprep.mubr.msk.f32.mxu1 %vm6158_vm12, %v6157_v40  ;;  %v5082_v19 = vld [vmem:[#allocation5] sm:$0x1]  ;;  %vm1244_vm3 = vcmp.eq.s32.totalorder %v1236_v13, %v6431_v48  ;;  %v4518_v48 = vsub.f32 %v6864_v10, %v4517_v14 }
 0x125   : > { %5786 = vmatprep.mubr.msk.f32.mxu0 %vm6158_vm12, %v6157_v40  ;;  %5794 = vmatprep.subr.mxu0 %v6157_v40  ;;  %v5084_v26 = vsub.f32 %v5083_v20, %v5082_v19  ;;  %v6931_v38 = vrot.slane %v5082_v19, %v6336_v2 }
 0x126   : > { %5812 = vmatmul.mubr.msk.f32.vlgmr.msra.gmra.mxu1 %vm1261_vm11, %v6705_v34  ;;  %5819 = vmatprep.subr.mxu1 %v6157_v40  ;;  %v4519_v33 = vand.u32 4294901760, %v4518_v48 }
 0x127   : > { %5787 = vmatmul.mubr.f32.vlgmr.msra.gmra.mxu0 %v2682_v15  ;;  %5820 = vmatpush3.msra.mxu1 %v3172_v56  ;;  %v6896_v28 = vpop.permute.xlu1 %4877  ;;  %v6912_v32 = vrot.slane %v5084_v26, %v6336_v2 }
 0x128   : > { %5795 = vmatpush3.msra.mxu0 %v6680_v27  ;;  %5821 = vmatprep.mubr.msk.f32.mxu1 %vm6158_vm12, %v6157_v40  ;;  %v6891_v27 = vsel %vm1244_vm3, 1.0, %v6157_v40 }
 0x129   : > { %5796 = vmatprep.mubr.msk.f32.mxu0 %vm6158_vm12, %v6157_v40  ;;  %5804 = vmatprep.subr.mxu0 %v6157_v40  ;;  %v5090_v37 = vmul.f32 %v6912_v32, %v6896_v28  ;;  %v5091_v49 = vmul.f32 %v6912_v32, %v6933_v39 }
 0x12a   : > { %5822 = vmatmul.mubr.msk.f32.vlgmr.msra.gmra.mxu1 %vm1261_vm11, %v6751_v17  ;;  %5829 = vmatprep.subr.mxu1 %v6157_v40 }
 0x12b   : > { %5797 = vmatmul.mubr.f32.vlgmr.msra.gmra.mxu0 %v2679_v43  ;;  %5830 = vmatpush3.msra.mxu1 %v6710_v36  ;;  %v5102_v45 = vadd.f32 %v6931_v38, %v5090_v37  ;;  %v5103_v15 = vadd.f32 %v6931_v38, %v5091_v49 }
 0x12c   : > { %5805 = vmatpush3.msra.mxu0 %v2721_v31  ;;  %5831 = vmatprep.mubr.msk.f32.mxu1 %vm6158_vm12, %v6157_v40  ;;  %v4406_v31 = vsel %vm1261_vm11, %v6891_v27, 0 }
 0x12d   : > { %5806 = vmatprep.mubr.msk.f32.mxu0 %vm6158_vm12, %v6157_v40  ;;  %5814 = vmatprep.subr.mxu0 %v6157_v40 }
 0x12e   : > { %5832 = vmatmul.mubr.f32.vlgmr.msra.gmra.mxu1 %v3129_v23  ;;  %5839 = vmatprep.subr.mxu1 %v6157_v40 }
 0x12f   : > { %5807 = vmatmul.mubr.msk.f32.vlgmr.msra.gmra.mxu0 %vm1261_vm11, %v6705_v34  ;;  %5840 = vmatpush3.msra.mxu1 %v6710_v36  ;;  %v4475_v34 = vsub.f32 %v4406_v31, %v4406_v31 }
 0x130   : > { %5815 = vmatpush3.msra.mxu0 %v6710_v36  ;;  %5841 = vmatprep.mubr.msk.f32.mxu1 %vm6158_vm12, %v6157_v40  ;;  %v6923_v36 = vpop.permute.xlu1 %4891 }
 0x131   : > { %5816 = vmatprep.mubr.msk.f32.mxu0 %vm6158_vm12, %v6157_v40  ;;  %5824 = vmatprep.subr.mxu0 %v6157_v40  ;;  %v4476_v43 = vand.u32 4294901760, %v4475_v34  ;;  %v5092_v44 = vmul.f32 %v6912_v32, %v6923_v36 }
 0x132   : > { %5842 = vmatmul.mubr.msk.f32.vlgmr.msra.gmra.mxu1 %vm1261_vm11, %v6751_v17  ;;  %5849 = vmatprep.subr.mxu1 %v6157_v40 }
 0x133   : > { %5817 = vmatmul.mubr.f32.vlgmr.msra.gmra.mxu0 %v3131_v63  ;;  %5850 = vmatpush3.msra.mxu1 %v3621_v62  ;;  %v5104_v56 = vadd.f32 %v6931_v38, %v5092_v44 }
 0x134   : > { %5825 = vmatpush3.msra.mxu0 %v6726_v42  ;;  %5851 = vmatprep.mubr.msk.f32.mxu1 %vm6158_vm12, %v6157_v40  ;;  %v5089_v42 = vmul.f32 %v6912_v32, %v6902_v29  ;;  %v6956_v47 = vpop.permute.xlu1 %4905 }
 0x135   : > { %5826 = vmatprep.mubr.msk.f32.mxu0 %vm6158_vm12, %v6157_v40  ;;  %5834 = vmatprep.subr.mxu0 %v6157_v40  ;;  %v5094_v18 = vmul.f32 %v6912_v32, %v6956_v47 }
 0x136   : > { %5852 = vmatmul.mubr.msk.f32.vlgmr.msra.gmra.mxu1 %vm1261_vm11, %v6797_v24  ;;  %5859 = vmatprep.subr.mxu1 %v6157_v40 }
 0x137   : > { %5827 = vmatmul.mubr.f32.vlgmr.msra.gmra.mxu0 %v3128_v61  ;;  %5860 = vmatpush3.msra.mxu1 %v6756_v53  ;;  %v5093_v61 = vmul.f32 %v6912_v32, %v6965_v50  ;;  %v5106_v22 = vadd.f32 %v6931_v38, %v5094_v18 }
 0x138   : > { %5835 = vmatpush3.msra.mxu0 %v3170_v46  ;;  %5861 = vmatprep.mubr.msk.f32.mxu1 %vm6158_vm12, %v6157_v40  ;;  %v6954_v46 = vld [vmem:[%s7374_s3] sm:$0xff] }
 0x139   : > { %5836 = vmatprep.mubr.msk.f32.mxu0 %vm6158_vm12, %v6157_v40  ;;  %5844 = vmatprep.subr.mxu0 %v6157_v40  ;;  %v6972_v54 = vadd.f32 %v6954_v46, %v5102_v45  ;;  %v7001_v23 = vadd.f32 %v6954_v46, %v5103_v15  ;;  %v7010_v41 = vadd.f32 %v6954_v46, %v5106_v22 }
 0x13a   : > { %5862 = vmatmul.mubr.f32.vlgmr.msra.gmra.mxu1 %v3578_v3  ;;  %5869 = vmatprep.subr.mxu1 %v6157_v40 }
 0x13b   : > { %5837 = vmatmul.mubr.msk.f32.vlgmr.msra.gmra.mxu0 %vm1261_vm11, %v6751_v17  ;;  %5870 = vmatpush3.msra.mxu1 %v6756_v53  ;;  %v5101_v17 = vadd.f32 %v6931_v38, %v5089_v42 }
 0x13c   : > { %5845 = vmatpush3.msra.mxu0 %v6756_v53  ;;  %5871 = vmatprep.mubr.msk.f32.mxu1 %vm6158_vm12, %v6157_v40  ;;  %v4477_v53 = vsub.f32 %v4475_v34, %v4476_v43 }
 0x13d   : > { %5846 = vmatprep.mubr.msk.f32.mxu0 %vm6158_vm12, %v6157_v40  ;;  %5854 = vmatprep.subr.mxu0 %v6157_v40 }
 0x13e   : > { %5872 = vmatmul.mubr.msk.f32.vlgmr.msra.gmra.mxu1 %vm1261_vm11, %v6797_v24  ;;  %5879 = vmatprep.subr.mxu1 %v6157_v40  ;;  %v4478_v16 = vand.u32 4294901760, %v4477_v53 }
 0x13f   : > { %5847 = vmatmul.mubr.f32.vlgmr.msra.gmra.mxu0 %v3580_v12  ;;  %5880 = vmatpush3.msra.mxu1 %v4070_v9 }
 0x140   : > { %5855 = vmatpush3.msra.mxu0 %v6772_v57  ;;  %5881 = vmatprep.mubr.msk.f32.mxu1 %vm6158_vm12, %v6157_v40  ;;  %v6981_v57 = vadd.f32 %v6954_v46, %v5101_v17 }
 0x141   : > { %5856 = vmatprep.mubr.msk.f32.mxu0 %vm6158_vm12, %v6157_v40  ;;  %5864 = vmatprep.subr.mxu0 %v6157_v40 }
 0x142   : > { %5882 = vmatmul.mubr.msk.f32.vlgmr.msra.gmra.mxu1 %vm1261_vm11, %v6843_v4  ;;  %5889 = vmatprep.subr.mxu1 %v6157_v40 }
 0x143   : > { %5857 = vmatmul.mubr.f32.vlgmr.msra.gmra.mxu0 %v3577_v52  ;;  %5890 = vmatpush3.msra.mxu1 %v6802_v55 }
 0x144   : > { %5865 = vmatpush3.msra.mxu0 %v3619_v21  ;;  %5891 = vmatprep.mubr.msk.f32.mxu1 %vm6158_vm12, %v6157_v40  ;;  %v6996_v21 = vadd.f32 %v6954_v46, %v5104_v56 }
 0x145   : > { %5866 = vmatprep.mubr.msk.f32.mxu0 %vm6158_vm12, %v6157_v40  ;;  %5874 = vmatprep.subr.mxu0 %v6157_v40 }
 0x146   : > { %5892 = vmatmul.mubr.f32.vlgmr.msra.gmra.mxu1 %v4027_v25  ;;  %5899 = vmatprep.subr.mxu1 %v6157_v40 }
 0x147   : > { %5867 = vmatmul.mubr.msk.f32.vlgmr.msra.gmra.mxu0 %vm1261_vm11, %v6797_v24  ;;  %5900 = vmatpush3.msra.mxu1 %v6802_v55  ;;  %v5105_v24 = vadd.f32 %v6931_v38, %v5093_v61 }
 0x148   : > { %5875 = vmatpush3.msra.mxu0 %v6802_v55  ;;  %5901 = vmatprep.mubr.msk.f32.mxu1 %vm6158_vm12, %v6157_v40 }
 0x149   : > { %5876 = vmatprep.mubr.msk.f32.mxu0 %vm6158_vm12, %v6157_v40  ;;  %5884 = vmatprep.subr.mxu0 %v6157_v40  ;;  %v7014_v55 = vadd.f32 %v6954_v46, %v5105_v24 }
 0x14a   : > { %5902 = vmatmul.mubr.msk.f32.vlgmr.msra.gmra.mxu1 %vm1261_vm11, %v6843_v4  ;;  %5909 = vmatprep.subr.mxu1 %v6157_v40 }
 0x14b   : > { %5877 = vmatmul.mubr.f32.vlgmr.msra.gmra.mxu0 %v4029_v35  ;;  %5910 = vmatpush3.msra.mxu1 %v4519_v33 }
 0x14c   : > { %5885 = vmatpush3.msra.mxu0 %v6818_v59  ;;  %5911 = vmatprep.mubr.msk.f32.mxu1 %vm6158_vm12, %v6157_v40 }
 0x14d   : > { %5886 = vmatprep.mubr.msk.f32.mxu0 %vm6158_vm12, %v6157_v40  ;;  %5894 = vmatprep.subr.mxu0 %v6157_v40 }
 0x14e   : > { %5912 = vmatmul.mubr.msk.f32.vlgmr.msra.gmra.mxu1 %vm1261_vm11, %v6891_v27  ;;  %5919 = vmatprep.subr.mxu1 %v6157_v40 }
 0x14f   : > { %5887 = vmatmul.mubr.f32.vlgmr.msra.gmra.mxu0 %v6869_v11  ;;  %5920 = vmatpush3.msra.mxu1 %v6848_v6 }
 0x150   : > { %5895 = vmatpush3.msra.mxu0 %v4068_v0  ;;  %5921 = vmatprep.mubr.msk.f32.mxu1 %vm6158_vm12, %v6157_v40 }
 0x151   : > { %5896 = vmatprep.mubr.msk.f32.mxu0 %vm6158_vm12, %v6157_v40  ;;  %5904 = vmatprep.subr.mxu0 %v6157_v40 }
 0x152   : > { %5922 = vmatmul.mubr.f32.vlgmr.msra.gmra.mxu1 %v4476_v43  ;;  %5929 = vmatprep.subr.mxu1 %v6157_v40 }
 0x153   : > { %5897 = vmatmul.mubr.msk.f32.vlgmr.msra.gmra.mxu0 %vm1261_vm11, %v6843_v4  ;;  %5930 = vmatpush3.msra.mxu1 %v6848_v6 }
 0x154   : > { %5905 = vmatpush3.msra.mxu0 %v6848_v6  ;;  %5931 = vmatprep.mubr.msk.f32.mxu1 %vm6158_vm12, %v6157_v40 }
 0x155   : > { %5906 = vmatprep.mubr.msk.f32.mxu0 %vm6158_vm12, %v6157_v40  ;;  %5914 = vmatprep.subr.mxu0 %v6157_v40 }
 0x156   : > { %5932 = vmatmul.mubr.msk.f32.vlgmr.msra.gmra.mxu1 %vm1261_vm11, %v6891_v27  ;;  %5120 = vadd.xlane.f32.xlu0 %v6972_v54 }
 0x157   : > { %5907 = vmatmul.mubr.f32.vlgmr.msra.gmra.mxu0 %v4478_v16  ;;  %5118 = vadd.xlane.f32.xlu1 %v6981_v57 }
 0x158   : > { %5915 = vmatpush3.msra.mxu0 %v6864_v10  ;;  %5916 = vmatprep.mubr.msk.f32.mxu0 %vm6158_vm12, %v6157_v40 }
 0x159   : > { %5924 = vmatprep.subr.mxu0 %v6157_v40 }
 0x15a   : > { %5124 = vadd.xlane.f32.xlu0 %v6996_v21 }
 0x15b   : > { %5917 = vmatmul.mubr.f32.vlgmr.msra.gmra.mxu0 %v4475_v34  ;;  %5122 = vadd.xlane.f32.xlu1 %v7001_v23 }
 0x15c   : > { %5925 = vmatpush3.msra.mxu0 %v4517_v14  ;;  %5926 = vmatprep.mubr.msk.f32.mxu0 %vm6158_vm12, %v6157_v40 }
 0x15e   : > { %5128 = vadd.xlane.f32.xlu0 %v7010_v41 }
 0x15f   : > { %5927 = vmatmul.mubr.msk.f32.vlgmr.msra.gmra.mxu0 %vm1261_vm11, %v6891_v27  ;;  %5126 = vadd.xlane.f32.xlu1 %v7014_v55 }
 0x18a   : > { %v7024_v58 = vpop.f32.mrf.mxu1 }
 0x18c   : > { %v7026_v51 = vpop.f32.mrf.mxu1 }
 0x18e   : > { %v5623_v62 = vpop.f32.mrf.mxu1 }
 0x190   : > { %v656_v59 = vpop.f32.mrf.mxu1 }
 0x192   : > { %v5626_v52 = vpop.f32.mrf.mxu1 }
 0x193   : > { %v7028_v63 = vpop.f32.mrf.mxu0 }
 0x194   : > { %v668_v60 = vpop.f32.mrf.mxu1 }
 0x195   : > { %v7030_v0 = vpop.f32.mrf.mxu0 }
 0x196   : > { %v5629_v40 = vpop.f32.mrf.mxu1 }
 0x197   : > { %v5607_v1 = vpop.f32.mrf.mxu0 }
 0x198   : > { %v663_v3 = vadd.f32 %v5623_v62, %v5607_v1  ;;  %v680_v4 = vpop.f32.mrf.mxu1 }
 0x199   : > { %v513_v5 = vpop.f32.mrf.mxu0 }
 0x19a   : > { %v657_v6 = vadd.f32 %v656_v59, %v513_v5  ;;  %v7032_v7 = vpop.f32.mrf.mxu1 }
 0x19b   : > { %v5610_v8 = vpop.f32.mrf.mxu0 }
 0x19c   : > { %v675_v9 = vadd.f32 %v5626_v52, %v5610_v8  ;;  %v7034_v10 = vpop.f32.mrf.mxu1 }
 0x19d   : > { %v533_v11 = vpop.f32.mrf.mxu0 }
 0x19e   : > { %v669_v12 = vadd.f32 %v668_v60, %v533_v11  ;;  %v5655_v13 = vpop.f32.mrf.mxu1 }
 0x19f   : > { %v5613_v14 = vpop.f32.mrf.mxu0 }
 0x1a0   : > { %v687_v19 = vadd.f32 %v5629_v40, %v5613_v14  ;;  %v902_v20 = vpop.f32.mrf.mxu1 }
 0x1a1   : > { %v553_v25 = vpop.f32.mrf.mxu0 }
 0x1a2   : > { %v681_v26 = vadd.f32 %v680_v4, %v553_v25  ;;  %v5658_v27 = vpop.f32.mrf.mxu1 }
 0x1a3   : > { %v7036_v48 = vpop.f32.mrf.mxu0 }
 0x1a4   : > { %v918_v30 = vpop.f32.mrf.mxu1 }
 0x1a5   : > { %v762_v31 = vpop.f32.mrf.mxu0 }
 0x1a6   : > { %v5661_v33 = vpop.f32.mrf.mxu1 }
 0x1a7   : > { %v5639_v34 = vpop.f32.mrf.mxu0 }
 0x1a8   : > { %v784_v35 = vadd.f32 %v5639_v34, %v663_v3  ;;  %v934_v37 = vpop.f32.mrf.mxu1 }
 0x1a9   : > { %v776_v42 = vpop.f32.mrf.mxu0 }
 0x1aa   : > { %v777_v43 = vadd.f32 %v776_v42, %v657_v6  ;;  %v7038_v44 = vpop.f32.mrf.mxu1  ;;  %v911_v45 = vadd.f32 %v5655_v13, %v784_v35 }
 0x1ab   : > { %v5642_v49 = vpop.f32.mrf.mxu0 }
 0x1ac   : > { %v798_v17 = vadd.f32 %v5642_v49, %v675_v9  ;;  %v1134_v53 = vpop.f32.mrf.mxu1  ;;  %v7040_v18 = vadd.f32 %v902_v20, %v777_v43  ;;  %v645_v49 = vadd.f32 %v7026_v51, %v7030_v0 }
 0x1ad   : > { %v790_v56 = vpop.f32.mrf.mxu0 }
 0x1ae   : > { %v791_v61 = vadd.f32 %v790_v56, %v669_v12  ;;  %v5687_v15 = vpop.f32.mrf.mxu1  ;;  %v927_v16 = vadd.f32 %v5658_v27, %v798_v17 }
 0x1af   : > { %v5645_v22 = vpop.f32.mrf.mxu0 }
 0x1b0   : > { %v812_v24 = vadd.f32 %v5645_v22, %v687_v19  ;;  %v7042_v62 = vpop.f32.mrf.mxu1  ;;  %v919_v59 = vadd.f32 %v918_v30, %v791_v61 }
 0x1b1   : > { %v804_v52 = vpop.f32.mrf.mxu0 }
 0x1b2   : > { %v805_v60 = vadd.f32 %v804_v52, %v681_v26  ;;  %v5690_v40 = vpop.f32.mrf.mxu1  ;;  %v943_v1 = vadd.f32 %v5661_v33, %v812_v24 }
 0x1b3   : > { %v7044_v3 = vpop.f32.mrf.mxu0 }
 0x1b4   : > { %v1158_v4 = vpop.f32.mrf.mxu1  ;;  %v935_v5 = vadd.f32 %v934_v37, %v805_v60 }
 0x1b5   : > { %v1019_v6 = vpop.f32.mrf.mxu0 }
 0x1b6   : > { %v5693_v8 = vpop.f32.mrf.mxu1 }
 0x1b7   : > { %v5671_v9 = vpop.f32.mrf.mxu0 }
 0x1b8   : > { %v1038_v11 = vadd.f32 %v5671_v9, %v911_v45  ;;  %v1170_v12 = vpop.f32.mrf.mxu1 }
 0x1b9   : > { %v7046_v13 = vpop.f32.mrf.mxu0 }
 0x1ba   : > { %v7048_v14 = vadd.f32 %v5687_v15, %v1038_v11  ;;  %v1413_v19 = vpop.f32.mrf.mxu1 }
 0x1bb   : > { %v5674_v20 = vpop.f32.mrf.mxu0 }
 0x1bc   : > { %v1050_v25 = vadd.f32 %v5674_v20, %v927_v16  ;;  %v5703_v27 = vpop.f32.mrf.mxu1  ;;  %v763_v16 = vadd.f32 %v762_v31, %v645_v49  ;;  %v651_v31 = vadd.f32 %v7024_v58, %v7028_v63 }
 0x1bd   : > { %v1043_v26 = vpop.f32.mrf.mxu0 }
 0x1be   : > { %v7050_v30 = vadd.f32 %v5690_v40, %v1050_v25  ;;  %v1044_v33 = vadd.f32 %v1043_v26, %v919_v59  ;;  %v1561_v34 = vpop.f32.mrf.mxu1 }
 0x1bf   : > { %v5677_v35 = vpop.f32.mrf.mxu0 }
 0x1c0   : > { %v7052_v37 = vadd.f32 %v1158_v4, %v1044_v33  ;;  %v1062_v42 = vadd.f32 %v5677_v35, %v943_v1  ;;  %v5713_v43 = vpop.f32.mrf.mxu1  ;;  %v887_v1 = vadd.f32 %v7034_v10, %v763_v16  ;;  %v770_v35 = vadd.f32 %v7036_v48, %v651_v31 }
 0x1c1   : > { %v1055_v45 = vpop.f32.mrf.mxu0 }
 0x1c2   : > { %v7056_v17 = vadd.f32 %v5693_v8, %v1062_v42  ;;  %v1056_v56 = vadd.f32 %v1055_v45, %v935_v5  ;;  %v1707_v61 = vpop.f32.mrf.mxu1  ;;  %v1020_v20 = vadd.f32 %v1019_v6, %v887_v1  ;;  %v895_v49 = vadd.f32 %v7032_v7, %v770_v35 }
 0x1c3   : > { %v1337_v15 = vpop.f32.mrf.mxu0 }
 0x1c4   : > { %v7058_v22 = vadd.f32 %v1170_v12, %v1056_v56  ;;  %v5723_v24 = vpop.f32.mrf.mxu1  ;;  %v1414_v52 = vadd.f32 %v1413_v19, %v1337_v15  ;;  %v1135_v12 = vadd.f32 %v1134_v53, %v1020_v20  ;;  %v1026_v63 = vadd.f32 %v7044_v3, %v895_v49 }
 0x1c5   : > { %v5698_v59 = vpop.f32.mrf.mxu0 }
 0x1c6   : > { %v1862_v60 = vpop.f32.mrf.mxu1 }
 0x1c7   : > { %v1487_v40 = vpop.f32.mrf.mxu0 }
 0x1c8   : > { %v1488_v4 = vadd.f32 %v1487_v40, %v1414_v52  ;;  %v5733_v9 = vpop.f32.mrf.mxu1  ;;  %v1141_v52 = vadd.f32 %v7038_v44, %v1026_v63 }
 0x1c9   : > { %v5708_v11 = vpop.f32.mrf.mxu0 }
 0x1ca   : > { %v2010_v51 = vpop.f32.mrf.mxu1  ;;  %v1562_v0 = vadd.f32 %v1561_v34, %v1488_v4 }
 0x1cb   : > { %v1635_v8 = vpop.f32.mrf.mxu0 }
 0x1cc   : > { %v1636_v5 = vadd.f32 %v1635_v8, %v1562_v0  ;;  %v5743_v25 = vpop.f32.mrf.mxu1 }
 0x1cd   : > { %v5718_v27 = vpop.f32.mrf.mxu0 }
 0x1ce   : > { %v1708_v26 = vadd.f32 %v1707_v61, %v1636_v5  ;;  %v2156_v19 = vpop.f32.mrf.mxu1  ;;  %v1032_v5 = vadd.f32 %v7046_v13, %v7040_v18 }
 0x1cf   : > { %v1786_v33 = vpop.f32.mrf.mxu0 }
 0x1d0   : > { %v5753_v10 = vpop.f32.mrf.mxu1  ;;  %v7064_v42 = vadd.f32 %v1708_v26, %v1135_v12  ;;  %v1863_v6 = vadd.f32 %v1862_v60, %v1786_v33 }
 0x1d1   : > { %v5728_v43 = vpop.f32.mrf.mxu0 }
 0x1d2   : > { %4977 = vadd.xlane.f32.xlu0 %v7064_v42  ;;  %v2311_v34 = vpop.f32.mrf.mxu1 }
 0x1d3   : > { %v1936_v45 = vpop.f32.mrf.mxu0 }
 0x1d4   : > { %v1937_v56 = vadd.f32 %v1936_v45, %v1863_v6  ;;  %v5763_v15 = vpop.f32.mrf.mxu1 }
 0x1d5   : > { %v5738_v58 = vpop.f32.mrf.mxu0 }
 0x1d6   : > { %v2459_v53 = vpop.f32.mrf.mxu1  ;;  %v2011_v61 = vadd.f32 %v2010_v51, %v1937_v56 }
 0x1d7   : > { %v2084_v16 = vpop.f32.mrf.mxu0 }
 0x1d8   : > { %v2085_v48 = vadd.f32 %v2084_v16, %v2011_v61  ;;  %v5773_v24 = vpop.f32.mrf.mxu1 }
 0x1d9   : > { %v5748_v59 = vpop.f32.mrf.mxu0 }
 0x1da   : > { %v2157_v60 = vadd.f32 %v2156_v19, %v2085_v48  ;;  %v2605_v40 = vpop.f32.mrf.mxu1  ;;  %v1147_v19 = vadd.f32 %v7042_v62, %v1032_v5 }
 0x1db   : > { %v2235_v1 = vpop.f32.mrf.mxu0 }
 0x1dc   : > { %v5783_v4 = vpop.f32.mrf.mxu1  ;;  %v7070_v9 = vadd.f32 %v2157_v60, %v1141_v52  ;;  %v2312_v11 = vadd.f32 %v2311_v34, %v2235_v1 }
 0x1dd   : > { %v5758_v7 = vpop.f32.mrf.mxu0 }
 0x1de   : > { %v2760_v20 = vpop.f32.mrf.mxu1  ;;  %4979 = vadd.xlane.f32.xlu1 %v7070_v9 }
 0x1df   : > { %v2385_v3 = vpop.f32.mrf.mxu0 }
 0x1e0   : > { %v2386_v0 = vadd.f32 %v2385_v3, %v2312_v11  ;;  %v5793_v51 = vpop.f32.mrf.mxu1 }
 0x1e1   : > { %v5768_v8 = vpop.f32.mrf.mxu0 }
 0x1e2   : > { %v2908_v25 = vpop.f32.mrf.mxu1  ;;  %v2460_v44 = vadd.f32 %v2459_v53, %v2386_v0 }
 0x1e3   : > { %v2533_v27 = vpop.f32.mrf.mxu0 }
 0x1e4   : > { %v2534_v31 = vadd.f32 %v2533_v27, %v2460_v44  ;;  %v5803_v12 = vpop.f32.mrf.mxu1 }
 0x1e5   : > { %v5778_v26 = vpop.f32.mrf.mxu0 }
 0x1e6   : > { %v2606_v33 = vadd.f32 %v2605_v40, %v2534_v31  ;;  %v3054_v35 = vpop.f32.mrf.mxu1 }
 0x1e7   : > { %v2684_v10 = vpop.f32.mrf.mxu0 }
 0x1e8   : > { %v5813_v43 = vpop.f32.mrf.mxu1  ;;  %v7076_v6 = vadd.f32 %v2606_v33, %v1147_v19  ;;  %v2761_v45 = vadd.f32 %v2760_v20, %v2684_v10 }
 0x1e9   : > { %v5788_v34 = vpop.f32.mrf.mxu0 }
 0x1ea   : > { %4981 = vadd.xlane.f32.xlu0 %v7076_v6  ;;  %v3209_v49 = vpop.f32.mrf.mxu1 }
 0x1eb   : > { %v2834_v18 = vpop.f32.mrf.mxu0 }
 0x1ec   : > { %v2835_v13 = vadd.f32 %v2834_v18, %v2761_v45  ;;  %v5823_v56 = vpop.f32.mrf.mxu1 }
 0x1ed   : > { %v5798_v15 = vpop.f32.mrf.mxu0 }
 0x1ee   : > { %v3357_v58 = vpop.f32.mrf.mxu1  ;;  %v2909_v63 = vadd.f32 %v2908_v25, %v2835_v13 }
 0x1ef   : > { %v2982_v53 = vpop.f32.mrf.mxu0 }
 0x1f0   : > { %v2983_v61 = vadd.f32 %v2982_v53, %v2909_v63  ;;  %v5833_v62 = vpop.f32.mrf.mxu1 }
 0x1f1   : > { %v5808_v16 = vpop.f32.mrf.mxu0 }
 0x1f2   : > { %v3055_v48 = vadd.f32 %v3054_v35, %v2983_v61  ;;  %v3503_v24 = vpop.f32.mrf.mxu1  ;;  %v7087_v61 = vpop.permute.xlu1 %4919 }
 0x1f3   : > { %v3133_v59 = vpop.f32.mrf.mxu0 }
 0x1f4   : > { %v5843_v52 = vpop.f32.mrf.mxu1  ;;  %v7080_v60 = vadd.f32 %v3055_v48, %v7048_v14  ;;  %v3210_v1 = vadd.f32 %v3209_v49, %v3133_v59 }
 0x1f5   : > { %v5818_v40 = vpop.f32.mrf.mxu0 }
 0x1f6   : > { %4983 = vadd.xlane.f32.xlu0 %v7080_v60  ;;  %v3658_v4 = vpop.f32.mrf.mxu1  ;;  %v7093_v40 = vpop.permute.xlu0 %4912 }
 0x1f7   : > { %v3283_v7 = vpop.f32.mrf.mxu0 }
 0x1f8   : > { %v3284_v11 = vadd.f32 %v3283_v7, %v3210_v1  ;;  %v5853_v20 = vpop.f32.mrf.mxu1  ;;  %v5119_v7 = vpop.xlane.xlu1 %5118 }
 0x1f9   : > { %v5828_v3 = vpop.f32.mrf.mxu0  ;;  %v5095_v20 = vmul.f32 %v6912_v32, %v7093_v40 }
 0x1fa   : > { %v3806_v0 = vpop.f32.mrf.mxu1  ;;  %v3358_v51 = vadd.f32 %v3357_v58, %v3284_v11 }
 0x1fb   : > { %v3431_v8 = vpop.f32.mrf.mxu0 }
 0x1fc   : > { %v3432_v5 = vadd.f32 %v3431_v8, %v3358_v51  ;;  %v5863_v25 = vpop.f32.mrf.mxu1 }
 0x1fd   : > { %v5838_v44 = vpop.f32.mrf.mxu0 }
 0x1fe   : > { %v3504_v27 = vadd.f32 %v3503_v24, %v3432_v5  ;;  %v3952_v31 = vpop.f32.mrf.mxu1 }
 0x1ff   : > { %v3582_v12 = vpop.f32.mrf.mxu0 }
 0x200   : > { %v5873_v14 = vpop.f32.mrf.mxu1  ;;  %v7084_v26 = vadd.f32 %v3504_v27, %v7052_v37  ;;  %v3659_v33 = vadd.f32 %v3658_v4, %v3582_v12  ;;  %v5107_v27 = vadd.f32 %v6931_v38, %v5095_v20 }
 0x201   : > { %v5848_v19 = vpop.f32.mrf.mxu0  ;;  %v5134_v14 = vmul.f32 0.0078125, %v5119_v7 }
 0x202   : > { %v4107_v35 = vpop.f32.mrf.mxu1  ;;  %4985 = vadd.xlane.f32.xlu1 %v7084_v26 }
 0x203   : > { %v3732_v10 = vpop.f32.mrf.mxu0 }
 0x204   : > { %v3733_v43 = vadd.f32 %v3732_v10, %v3659_v33  ;;  %v5883_v34 = vpop.f32.mrf.mxu1 }
 0x205   : > { %v5858_v45 = vpop.f32.mrf.mxu0 }
 0x206   : > { %v4255_v49 = vpop.f32.mrf.mxu1  ;;  %v3807_v18 = vadd.f32 %v3806_v0, %v3733_v43  ;;  %v7103_v43 = vadd.f32 %v6954_v46, %v5107_v27  ;;  %v5121_v45 = vpop.xlane.xlu0 %5120 }
 0x207   : > { %v3880_v13 = vpop.f32.mrf.mxu0 }
 0x208   : > { %v3881_v56 = vadd.f32 %v3880_v13, %v3807_v18  ;;  %v5893_v15 = vpop.f32.mrf.mxu1 }
 0x209   : > { %v5868_v58 = vpop.f32.mrf.mxu0 }
 0x20a   : > { %v3953_v63 = vadd.f32 %v3952_v31, %v3881_v56  ;;  %v4401_v53 = vpop.f32.mrf.mxu1  ;;  %v5123_v31 = vpop.xlane.xlu1 %5122 }
 0x20b   : > { %v4031_v37 = vpop.f32.mrf.mxu0  ;;  %v5136_v18 = vmul.f32 0.0078125, %v5123_v31 }
 0x20c   : > { %v5903_v62 = vpop.f32.mrf.mxu1  ;;  %v7090_v16 = vadd.f32 %v3953_v63, %v7050_v30  ;;  %v4108_v24 = vadd.f32 %v4107_v35, %v4031_v37 }
 0x20d   : > { %v5878_v48 = vpop.f32.mrf.mxu0 }
 0x20e   : > { %4987 = vadd.xlane.f32.xlu0 %v7090_v16  ;;  %v4556_v59 = vpop.f32.mrf.mxu1  ;;  %v5127_v56 = vpop.xlane.xlu1 %5126 }
 0x20f   : > { %v4181_v52 = vpop.f32.mrf.mxu0  ;;  %v5138_v37 = vmul.f32 0.0078125, %v5127_v56 }
 0x210   : > { %v4182_v1 = vadd.f32 %v4181_v52, %v4108_v24  ;;  %v5913_v4 = vpop.f32.mrf.mxu1  ;;  %v5125_v52 = vpop.xlane.xlu0 %5124 }
 0x211   : > { %v5888_v11 = vpop.f32.mrf.mxu0  ;;  %v5137_v20 = vmul.f32 0.0078125, %v5125_v52 }
 0x212   : > { %v4704_v3 = vpop.f32.mrf.mxu1  ;;  %v4256_v0 = vadd.f32 %v4255_v49, %v4182_v1  ;;  %v7106_v49 = vsub.f32 %v6981_v57, %v5134_v14  ;;  %v5135_v1 = vmul.f32 0.0078125, %v5121_v45 }
 0x213   : > { %v4329_v51 = vpop.f32.mrf.mxu0 }
 0x214   : > { %v4330_v30 = vadd.f32 %v4329_v51, %v4256_v0  ;;  %v5923_v8 = vpop.f32.mrf.mxu1  ;;  %v5150_v57 = vmul.f32 %v7106_v49, %v7106_v49  ;;  %v7125_v11 = vsub.f32 %v6972_v54, %v5135_v1 }
 0x215   : > { %v5898_v5 = vpop.f32.mrf.mxu0 }
 0x216   : > { %v4402_v25 = vadd.f32 %v4401_v53, %v4330_v30  ;;  %v4850_v44 = vpop.f32.mrf.mxu1  ;;  %v7112_v53 = vsub.f32 %v7001_v23, %v5136_v18  ;;  %v5151_v0 = vmul.f32 %v7125_v11, %v7125_v11 }
 0x217   : > { %v4480_v12 = vpop.f32.mrf.mxu0 }
 0x218   : > { %v5933_v19 = vpop.f32.mrf.mxu1  ;;  %v7099_v33 = vadd.f32 %v4402_v25, %v7058_v22  ;;  %v4557_v10 = vadd.f32 %v4556_v59, %v4480_v12  ;;  %v5096_v22 = vmul.f32 %v6912_v32, %v7087_v61  ;;  %v7118_v32 = vsub.f32 %v7014_v55, %v5138_v37 }
 0x219   : > { %v5908_v35 = vpop.f32.mrf.mxu0  ;;  %v5152_v23 = vmul.f32 %v7112_v53, %v7112_v53  ;;  %v7130_v55 = vsub.f32 %v6996_v21, %v5137_v20 }
 0x21a   : > { %4989 = vadd.xlane.f32.xlu1 %v7099_v33  ;;  %v5108_v59 = vadd.f32 %v6931_v38, %v5096_v22  ;;  %v5154_v38 = vmul.f32 %v7118_v32, %v7118_v32 }
 0x21b   : > { %v4630_v34 = vpop.f32.mrf.mxu0  ;;  %v5153_v54 = vmul.f32 %v7130_v55, %v7130_v55 }
 0x21c   : > { %v4631_v13 = vadd.f32 %v4630_v34, %v4557_v10  ;;  %v5117_v7 = vadd.f32 %v6954_v46, %v5108_v59 }
 0x21d   : > { %v5918_v15 = vpop.f32.mrf.mxu0 }
 0x21e   : > { %5130 = vadd.xlane.f32.xlu1 %v7103_v43  ;;  %v4705_v58 = vadd.f32 %v4704_v3, %v4631_v13  ;;  %v5129_v3 = vpop.xlane.xlu0 %5128 }
 0x21f   : > { %v4778_v63 = vpop.f32.mrf.mxu0 }
 0x220   : > { %v4779_v62 = vadd.f32 %v4778_v63, %v4705_v58 }
 0x221   : > { %v5928_v48 = vpop.f32.mrf.mxu0 }
 0x222   : > { %v4851_v24 = vadd.f32 %v4850_v44, %v4779_v62  ;;  %5158 = vadd.xlane.f32.xlu1 %v5150_v57 }
 0x224   : > { %v4861_v4 = vadd.f32 %v4851_v24, %v7056_v17  ;;  %v5139_v17 = vmul.f32 0.0078125, %v5129_v3 }
 0x226   : > { %4991 = vadd.xlane.f32.xlu0 %v4861_v4  ;;  %5162 = vadd.xlane.f32.xlu1 %v5152_v23  ;;  %v7135_v46 = vsub.f32 %v7010_v41, %v5139_v17 }
 0x228   : > { %v5155_v51 = vmul.f32 %v7135_v46, %v7135_v46 }
 0x22a   : > { %5132 = vadd.xlane.f32.xlu0 %v5117_v7  ;;  %5166 = vadd.xlane.f32.xlu1 %v5154_v38 }
 0x22e   : > { %5160 = vadd.xlane.f32.xlu0 %v5151_v0 }
 0x232   : > { %5164 = vadd.xlane.f32.xlu0 %v5153_v54 }
 0x236   : > { %5168 = vadd.xlane.f32.xlu0 %v5155_v51 }
 0x25b   : > { %v4978_v30 = vpop.xlane.xlu0 %4977 }
 0x25c   : > { %v4994_v8 = vmul.f32 0.0078125, %v4978_v30 }
 0x25e   : > { %v7142_v21 = vsub.f32 %v7064_v42, %v4994_v8 }
 0x260   : > { %v5010_v5 = vmul.f32 %v7142_v21, %v7142_v21 }
 0x262   : > { %5018 = vadd.xlane.f32.xlu1 %v5010_v5 }
 0x267   : > { %v4980_v25 = vpop.xlane.xlu1 %4979 }
 0x268   : > { %v4995_v41 = vmul.f32 0.0078125, %v4980_v25  ;;  %v4923_v25 = vld [vmem:[%s7376_s5 + $0x2] sm:$0x1] }
 0x26a   : > { %v7147_v44 = vsub.f32 %v7070_v9, %v4995_v41  ;;  %v4922_v41 = vld [vmem:[%s7376_s5 + $0x1] sm:$0x1] }
 0x26c   : > { %v5011_v27 = vmul.f32 %v7147_v44, %v7147_v44 }
 0x26e   : > { %5020 = vadd.xlane.f32.xlu0 %v5011_v27  ;;  %v4924_v27 = vld [vmem:[%s7376_s5 + $0x3] sm:$0x1] }
 0x273   : > { %v4982_v31 = vpop.xlane.xlu0 %4981 }
 0x274   : > { %v4996_v12 = vmul.f32 0.0078125, %v4982_v31 }
 0x276   : > { %v7152_v14 = vsub.f32 %v7076_v6, %v4996_v12 }
 0x278   : > { %v5012_v42 = vmul.f32 %v7152_v14, %v7152_v14 }
 0x27a   : > { %5022 = vadd.xlane.f32.xlu1 %v5012_v42 }
 0x27f   : > { %v4984_v19 = vpop.xlane.xlu0 %4983 }
 0x280   : > { %v4997_v35 = vmul.f32 0.0078125, %v4984_v19  ;;  %v4952_v19 = vsub.f32 %v4924_v27, %v4922_v41 }
 0x282   : > { %v7157_v10 = vsub.f32 %v7080_v60, %v4997_v35 }
 0x284   : > { %v5013_v9 = vmul.f32 %v7157_v10, %v7157_v10 }
 0x286   : > { %5024 = vadd.xlane.f32.xlu0 %v5013_v9 }
 0x28b   : > { %v4986_v34 = vpop.xlane.xlu1 %4985 }
 0x28c   : > { %v4998_v45 = vmul.f32 0.0078125, %v4986_v34 }
 0x28e   : > { %v7162_v18 = vsub.f32 %v7084_v26, %v4998_v45 }
 0x290   : > { %v5014_v6 = vmul.f32 %v7162_v18, %v7162_v18 }
 0x292   : > { %5026 = vadd.xlane.f32.xlu1 %v5014_v6  ;;  %v7209_v6 = vrot.slane %v4952_v19, %v6336_v2 }
 0x297   : > { %v4988_v13 = vpop.xlane.xlu0 %4987 }
 0x298   : > { %v4999_v56 = vmul.f32 0.0078125, %v4988_v13 }
 0x29a   : > { %v7167_v15 = vsub.f32 %v7090_v16, %v4999_v56 }
 0x29c   : > { %v5015_v60 = vmul.f32 %v7167_v15, %v7167_v15 }
 0x29e   : > { %5028 = vadd.xlane.f32.xlu0 %v5015_v60 }
 0x2a3   : > { %v4990_v22 = vpop.xlane.xlu1 %4989 }
 0x2a4   : > { %v5000_v58 = vmul.f32 0.0078125, %v4990_v22 }
 0x2a6   : > { %v7172_v63 = vsub.f32 %v7099_v33, %v5000_v58  ;;  %v7217_v58 = vld [vmem:[%s7376_s5 + $0x4] ss:$0 sm:$0xff] }
 0x2a7   : > { %v5131_v26 = vpop.xlane.xlu1 %5130 }
 0x2a8   : > { %v5140_v37 = vmul.f32 0.0078125, %v5131_v26  ;;  %v5016_v62 = vmul.f32 %v7172_v63, %v7172_v63 }
 0x2aa   : > { %v7177_v57 = vsub.f32 %v7103_v43, %v5140_v37  ;;  %5030 = vadd.xlane.f32.xlu1 %v5016_v62  ;;  %v4957_v37 = vmul.f32 %v7209_v6, %v6902_v29 }
 0x2ab   : > { %v5159_v20 = vpop.xlane.xlu1 %5158 }
 0x2ac   : > { %v5156_v16 = vmul.f32 %v7177_v57, %v7177_v57  ;;  %v5174_v3 = vmul.f32 0.0078125, %v5159_v20 }
 0x2ae   : > { %5170 = vadd.xlane.f32.xlu1 %v5156_v16  ;;  %v5182_v17 = vadd.f32 1e-12, %v5174_v3  ;;  %v7225_v16 = vrot.slane %v4922_v41, %v6336_v2 }
 0x2af   : > { %v4992_v48 = vpop.xlane.xlu0 %4991  ;;  %v5163_v38 = vpop.xlane.xlu1 %5162 }
 0x2b0   : > { %v5001_v24 = vmul.f32 0.0078125, %v4992_v48  ;;  %5997 = vrsqrt.f32 %v5182_v17  ;;  %v5176_v60 = vmul.f32 0.0078125, %v5163_v38 }
 0x2b2   : > { %v7181_v59 = vsub.f32 %v4861_v4, %v5001_v24  ;;  %v5184_v24 = vadd.f32 1e-12, %v5176_v60  ;;  %v4959_v60 = vmul.f32 %v7209_v6, %v6933_v39 }
 0x2b3   : > { %v5133_v52 = vpop.xlane.xlu0 %5132  ;;  %v7189_v0 = vpop.xlane.xlu1 %5166 }
 0x2b4   : > { %v5141_v33 = vmul.f32 0.0078125, %v5133_v52  ;;  %v5017_v1 = vmul.f32 %v7181_v59, %v7181_v59 }
 0x2b6   : > { %v7185_v23 = vsub.f32 %v5117_v7, %v5141_v33  ;;  %5032 = vadd.xlane.f32.xlu0 %v5017_v1  ;;  %v4921_v7 = vld [vmem:[%s7376_s5] sm:$0x1]  ;;  %v7233_v33 = vld [vmem:[%s7376_s5 + $0x5] ss:$0 sm:$0xff] }
 0x2b7   : > { %v5161_v4 = vpop.xlane.xlu0 %5160  ;;  %v4927_v42 = vsub.f32 %v4923_v25, %v4921_v7  ;;  %v7220_v26 = vrot.slane %v4921_v7, %v6336_v2 }
 0x2b8   : > { %v5157_v43 = vmul.f32 %v7185_v23, %v7185_v23  ;;  %v5175_v8 = vmul.f32 0.0078125, %v5161_v4 }
 0x2b9   : > { %v7206_v34 = vrot.slane %v4927_v42, %v6336_v2 }
 0x2ba   : > { %5172 = vadd.xlane.f32.xlu0 %v5157_v43  ;;  %v5183_v31 = vadd.f32 1e-12, %v5175_v8  ;;  %v4958_v8 = vmul.f32 %v7209_v6, %v6896_v28 }
 0x2bb   : > { %v5165_v30 = vpop.xlane.xlu0 %5164  ;;  %v4932_v13 = vmul.f32 %v7206_v34, %v6902_v29  ;;  %v4969_v29 = vadd.f32 %v7225_v16, %v4957_v37  ;;  %v4933_v4 = vmul.f32 %v7206_v34, %v6896_v28 }
 0x2bd   : > { %v5998_v35 = vpop.eup %5997  ;;  %v4945_v7 = vadd.f32 %v7220_v26, %v4933_v4 }
 0x2be   : > { %v5198_v56 = vmul.f32 %v5998_v35, %v7106_v49  ;;  %v4944_v49 = vadd.f32 %v7220_v26, %v4932_v13 }
 0x2bf   : > { %v7203_v12 = vpop.xlane.xlu0 %5168 }
 0x2c0   : > { %v5210_v48 = vmul.f32 %v7217_v58, %v5198_v56  ;;  %v5178_v56 = vmul.f32 0.0078125, %v7189_v0 }
 0x2c2   : > { %v5222_v43 = vadd.f32 %v7233_v33, %v5210_v48 }
 0x2eb   : > { %v5019_v54 = vpop.xlane.xlu1 %5018 }
 0x2ec   : > { %v5034_v51 = vmul.f32 0.0078125, %v5019_v54  ;;  %v5177_v54 = vmul.f32 0.0078125, %v5165_v30  ;;  %v4970_v30 = vadd.f32 %v7225_v16, %v4958_v8 }
 0x2ee   : > { %v5042_v5 = vadd.f32 1e-12, %v5034_v51  ;;  %v5185_v41 = vadd.f32 1e-12, %v5177_v54 }
 0x2f0   : > { %5999 = vrsqrt.f32 %v5042_v5 }
 0x2f1   : > { %6001 = vrsqrt.f32 %v5183_v31 }
 0x2f7   : > { %v5021_v9 = vpop.xlane.xlu0 %5020 }
 0x2f8   : > { %v5035_v45 = vmul.f32 0.0078125, %v5021_v9 }
 0x2fa   : > { %v5043_v22 = vadd.f32 1e-12, %v5035_v45  ;;  %v4934_v45 = vmul.f32 %v7206_v34, %v6933_v39 }
 0x2fc   : > { %6003 = vrsqrt.f32 %v5043_v22  ;;  %v4946_v37 = vadd.f32 %v7220_v26, %v4934_v45 }
 0x2fd   : > { %v6000_v62 = vpop.eup %5999  ;;  %6005 = vrsqrt.f32 %v5184_v24  ;;  %v4971_v24 = vadd.f32 %v7225_v16, %v4959_v60 }
 0x2fe   : > { %v5058_v52 = vmul.f32 %v6000_v62, %v7142_v21  ;;  %v6002_v20 = vpop.eup %6001 }
 0x2ff   : > { %v5199_v21 = vmul.f32 %v6002_v20, %v7125_v11 }
 0x300   : > { %v5066_v1 = vmul.f32 %v5058_v52, %v4944_v49  ;;  %v5186_v49 = vadd.f32 1e-12, %v5178_v56 }
 0x301   : > { %v5211_v25 = vmul.f32 %v7217_v58, %v5199_v21 }
 0x302   : > { %v5074_v2 = vadd.f32 %v5066_v1, %v4969_v29 }
 0x303   : > { %v5023_v38 = vpop.xlane.xlu1 %5022  ;;  %v5223_v31 = vadd.f32 %v7233_v33, %v5211_v25 }
 0x304   : > { %v5230_v3 = vadd.f32 %v5222_v43, %v5074_v2  ;;  %v5036_v17 = vmul.f32 0.0078125, %v5023_v38  ;;  %v4935_v2 = vmul.f32 %v7206_v34, %v6923_v36  ;;  %v5179_v38 = vmul.f32 0.0078125, %v7203_v12 }
 0x306   : > { %5238 = vst [vmem:[%s7242_s12] sm:$0xff] %v5230_v3  ;;  %v5044_v51 = vadd.f32 1e-12, %v5036_v17  ;;  %v4960_v3 = vmul.f32 %v7209_v6, %v6923_v36  ;;  %v4947_v4 = vadd.f32 %v7220_v26, %v4935_v2  ;;  %v5187_v54 = vadd.f32 1e-12, %v5179_v38 }
 0x308   : > { %6007 = vrsqrt.f32 %v5044_v51  ;;  %v4972_v8 = vadd.f32 %v7225_v16, %v4960_v3 }
 0x309   : > { %v6004_v5 = vpop.eup %6003  ;;  %6009 = vrsqrt.f32 %v5185_v41 }
 0x30a   : > { %v5059_v11 = vmul.f32 %v6004_v5, %v7147_v44  ;;  %v6006_v19 = vpop.eup %6005 }
 0x30b   : > { %v5200_v13 = vmul.f32 %v6006_v19, %v7112_v53 }
 0x30c   : > { %v5067_v27 = vmul.f32 %v5059_v11, %v4945_v7  ;;  %v4936_v11 = vmul.f32 %v7206_v34, %v6965_v50 }
 0x30d   : > { %v5212_v62 = vmul.f32 %v7217_v58, %v5200_v13 }
 0x30e   : > { %v5075_v42 = vadd.f32 %v5067_v27, %v4970_v30 }
 0x30f   : > { %v5025_v35 = vpop.xlane.xlu0 %5024  ;;  %v5224_v0 = vadd.f32 %v7233_v33, %v5212_v62 }
 0x310   : > { %v5231_v28 = vadd.f32 %v5223_v31, %v5075_v42  ;;  %v5037_v9 = vmul.f32 0.0078125, %v5025_v35  ;;  %v4948_v42 = vadd.f32 %v7220_v26, %v4936_v11  ;;  %v4964_v11 = vmul.f32 %v7209_v6, %v7087_v61 }
 0x312   : > { %5239 = vst [vmem:[%s7242_s12 + $0x8] sm:$0xff] %v5231_v28  ;;  %v5045_v44 = vadd.f32 1e-12, %v5037_v9 }
 0x314   : > { %6011 = vrsqrt.f32 %v5045_v44 }
 0x315   : > { %v6008_v22 = vpop.eup %6007  ;;  %6013 = vrsqrt.f32 %v5186_v49 }
 0x316   : > { %v5060_v48 = vmul.f32 %v6008_v22, %v7152_v14  ;;  %v6010_v29 = vpop.eup %6009 }
 0x317   : > { %v5201_v20 = vmul.f32 %v6010_v29, %v7130_v55 }
 0x318   : > { %v5068_v53 = vmul.f32 %v5060_v48, %v4946_v37 }
 0x319   : > { %v5213_v21 = vmul.f32 %v7217_v58, %v5201_v20 }
 0x31a   : > { %v5076_v52 = vadd.f32 %v5068_v53, %v4971_v24 }
 0x31b   : > { %v5027_v1 = vpop.xlane.xlu1 %5026  ;;  %v5225_v12 = vadd.f32 %v7233_v33, %v5213_v21 }
 0x31c   : > { %v5232_v39 = vadd.f32 %v5224_v0, %v5076_v52  ;;  %v5038_v43 = vmul.f32 0.0078125, %v5027_v1 }
 0x31e   : > { %5240 = vst [vmem:[%s7242_s12 + $0x10] sm:$0xff] %v5232_v39  ;;  %v5046_v14 = vadd.f32 1e-12, %v5038_v43 }
 0x320   : > { %6015 = vrsqrt.f32 %v5046_v14  ;;  %v4938_v14 = vmul.f32 %v7206_v34, %v7093_v40 }
 0x321   : > { %v6012_v17 = vpop.eup %6011  ;;  %6017 = vrsqrt.f32 %v5187_v54  ;;  %v4963_v54 = vmul.f32 %v7209_v6, %v7093_v40 }
 0x322   : > { %v5061_v51 = vmul.f32 %v6012_v17, %v7157_v10  ;;  %v6014_v7 = vpop.eup %6013  ;;  %v4961_v10 = vmul.f32 %v7209_v6, %v6965_v50  ;;  %v4937_v50 = vmul.f32 %v7206_v34, %v6956_v47  ;;  %v4950_v21 = vadd.f32 %v7220_v26, %v4938_v14 }
 0x323   : > { %v5202_v30 = vmul.f32 %v6014_v7, %v7118_v32 }
 0x324   : > { %v5069_v55 = vmul.f32 %v5061_v51, %v4947_v4  ;;  %v4973_v28 = vadd.f32 %v7225_v16, %v4961_v10  ;;  %v4949_v24 = vadd.f32 %v7220_v26, %v4937_v50 }
 0x325   : > { %v5214_v19 = vmul.f32 %v7217_v58, %v5202_v30 }
 0x326   : > { %v5077_v5 = vadd.f32 %v5069_v55, %v4972_v8 }
 0x327   : > { %v5029_v25 = vpop.xlane.xlu0 %5028  ;;  %v5226_v45 = vadd.f32 %v7233_v33, %v5214_v19 }
 0x328   : > { %v5233_v36 = vadd.f32 %v5225_v12, %v5077_v5  ;;  %v5039_v41 = vmul.f32 0.0078125, %v5029_v25  ;;  %v4975_v12 = vadd.f32 %v7225_v16, %v4963_v54  ;;  %v4939_v25 = vmul.f32 %v7206_v34, %v7087_v61 }
 0x32a   : > { %5241 = vst [vmem:[%s7242_s12 + $0x18] sm:$0xff] %v5233_v36  ;;  %v5047_v27 = vadd.f32 1e-12, %v5039_v41 }
 0x32c   : > { %6019 = vrsqrt.f32 %v5047_v27 }
 0x32d   : > { %v6016_v31 = vpop.eup %6015 }
 0x32e   : > { %v5062_v35 = vmul.f32 %v6016_v31, %v7162_v18  ;;  %v6018_v13 = vpop.eup %6017  ;;  %v4962_v18 = vmul.f32 %v7209_v6, %v6956_v47  ;;  %v4976_v31 = vadd.f32 %v7225_v16, %v4964_v11 }
 0x32f   : > { %v5203_v22 = vmul.f32 %v6018_v13, %v7135_v46 }
 0x330   : > { %v5070_v9 = vmul.f32 %v5062_v35, %v4948_v42  ;;  %v4974_v29 = vadd.f32 %v7225_v16, %v4962_v18 }
 0x331   : > { %v5215_v53 = vmul.f32 %v7217_v58, %v5203_v22 }
 0x332   : > { %v5078_v32 = vadd.f32 %v5070_v9, %v4973_v28 }
 0x333   : > { %v5031_v56 = vpop.xlane.xlu1 %5030  ;;  %v5227_v1 = vadd.f32 %v7233_v33, %v5215_v53 }
 0x334   : > { %v5234_v44 = vadd.f32 %v5226_v45, %v5078_v32  ;;  %v5040_v60 = vmul.f32 0.0078125, %v5031_v56 }
 0x336   : > { %5242 = vst [vmem:[%s7242_s12 + $0x20] sm:$0xff] %v5234_v44  ;;  %v5048_v37 = vadd.f32 1e-12, %v5040_v60 }
 0x337   : > { %v5171_v62 = vpop.xlane.xlu1 %5170 }
 0x338   : > { %6021 = vrsqrt.f32 %v5048_v37  ;;  %v5180_v49 = vmul.f32 0.0078125, %v5171_v62 }
 0x339   : > { %v6020_v48 = vpop.eup %6019 }
 0x33a   : > { %v5063_v0 = vmul.f32 %v6020_v48, %v7167_v15  ;;  %v5188_v52 = vadd.f32 1e-12, %v5180_v49 }
 0x33c   : > { %v5071_v46 = vmul.f32 %v5063_v0, %v4949_v24  ;;  %6023 = vrsqrt.f32 %v5188_v52 }
 0x33e   : > { %v5079_v39 = vadd.f32 %v5071_v46, %v4974_v29 }
 0x33f   : > { %v5033_v43 = vpop.xlane.xlu0 %5032 }
 0x340   : > { %v5235_v47 = vadd.f32 %v5227_v1, %v5079_v39  ;;  %v5041_v2 = vmul.f32 0.0078125, %v5033_v43 }
 0x342   : > { %5243 = vst [vmem:[%s7242_s12 + $0x28] sm:$0xff] %v5235_v47  ;;  %v5049_v20 = vadd.f32 1e-12, %v5041_v2 }
 0x343   : > { %v5173_v38 = vpop.xlane.xlu0 %5172 }
 0x344   : > { %6025 = vrsqrt.f32 %v5049_v20  ;;  %v5181_v3 = vmul.f32 0.0078125, %v5173_v38 }
 0x345   : > { %v6022_v15 = vpop.eup %6021 }
 0x346   : > { %v5064_v17 = vmul.f32 %v6022_v15, %v7172_v63  ;;  %v5189_v4 = vadd.f32 1e-12, %v5181_v3 }
 0x348   : > { %6027 = vrsqrt.f32 %v5189_v4  ;;  %v5072_v8 = vmul.f32 %v5064_v17, %v4950_v21 }
 0x349   : > { %v6024_v51 = vpop.eup %6023 }
 0x34a   : > { %v5204_v55 = vmul.f32 %v6024_v51, %v7177_v57  ;;  %v5080_v7 = vadd.f32 %v5072_v8, %v4975_v12  ;;  %v4951_v57 = vadd.f32 %v7220_v26, %v4939_v25 }
 0x34c   : > { %v5216_v5 = vmul.f32 %v7217_v58, %v5204_v55 }
 0x34e   : > { %v5228_v63 = vadd.f32 %v7233_v33, %v5216_v5 }
 0x350   : > { %v5236_v36 = vadd.f32 %v5228_v63, %v5080_v7 }
 0x351   : > { %v6026_v41 = vpop.eup %6025 }
 0x352   : > { %5244 = vst [vmem:[%s7242_s12 + $0x30] sm:$0xff] %v5236_v36  ;;  %v5065_v40 = vmul.f32 %v6026_v41, %v7181_v59 }
 0x354   : > { %v5073_v27 = vmul.f32 %v5065_v40, %v4951_v57 }
 0x355   : > { %v6028_v30 = vpop.eup %6027 }
 0x356   : > { %v5205_v10 = vmul.f32 %v6028_v30, %v7185_v23  ;;  %v5081_v42 = vadd.f32 %v5073_v27, %v4976_v31 }
 0x358   : > { %v5217_v34 = vmul.f32 %v7217_v58, %v5205_v10 }
 0x35a   : > { %v5229_v59 = vadd.f32 %v7233_v33, %v5217_v34 }
 0x35c   : > { %v5237_v61 = vadd.f32 %v5229_v59, %v5081_v42 }
 0x35e   : > { %5245 = vst [vmem:[%s7242_s12 + $0x38] sm:$0xff] %v5237_v61 }
 0x35f   : > { %6096 = shalt.err (!%p6093_p4)
}
 0x360   : > { %s6097_s29 = scalar_lea.hbm %s7325_s26, 1024  ;;  %s6101_s28 = scalar_lea.hbm %s7377_s6, 2048 }
 0x361   : > { %p6098_p11 = scmp.ne.s32.totalorder %s7325_s26, %s6097_s29  ;;  %p6102_p13 = scmp.lt.s32.totalorder %s7325_s26, %s7377_s6 }
 0x362   : > { %p6103_p3 = scmp.lt.s32.totalorder %s6101_s28, %s6097_s29 }
 0x363   : > { %p6099_p5 = pnand %p6098_p11, %p7395_p7 }
 0x364   : > { %p6104_p12 = por %p6103_p3, %p6102_p13 }
 0x365   : > { %p6100_p6 = pneg %p6099_p5 }
 0x367   : > { %p6105_p1 = pnand %p6104_p12, %p6100_p6 }
 0x369   : > { %6108 = shalt.err (!%p6105_p1)
}
 0x36a   : > { %s6160_s19 = smov 128   ;;  %s6161_s13 = smov 8  }
 0x36b   : > { %5940 = dma.vmem_to_hbm [thread:$0]  (%p7395_p7), %s7327_s18, 1024, %s7325_s26, %s5247_s30, %s6160_s19, %s6160_s19, %s6161_s13  }
 0x36c PF: > { %s5275_s20 = sand.u32 1, %s6139_s21   ;;  %p7396_p8 = scmp.ne.s32.totalorder %s7386_s10, 0 }
 0x36d   : > { %p7397_p9 = scmp.ge.s32.totalorder %s6151_s24, 2  ;;  %s5276_s11 = scalar_lea.sflag [#allocation4], %s5275_s20 }
 0x36f   : > { %p5951_p10 = pnand %p7397_p9, %p7396_p8 }
 0x371   : > { %p5952_p2 = pneg %p5951_p10 }
 0x373   : > { %6134 = dma.done.wait (%p5952_p2), %s5276_s11, 1024  }
 0x374   : > { %6136 = vsyncadd (%p5952_p2), %s5276_s11, 4294966272  ;;  %s7398_s25 = sld [smem:[#allocation11_spill]]  ;;  %p20_p0 = scmp.ge.s32.totalorder %s6222_s27, 4  }
 0x375   : > { %s7399_s21 = smov %s6143_s22  ;;  %s7400_s22 = smov %s6147_s23 }
 0x376   : > { %s7402_s24 = smov %s6222_s27  ;;  %22 = sbr.rel (!%p20_p0) target bundleno = 6 (0x6), region = 96 }
 0x37a   : > { %s7401_s23 = smov %s7398_s25 }
 0x37b   :  { %5281 = vsyncpa [#allocation3], 1 }
 0x37c   :  { %5283 = vsyncpa [#allocation3 + $0x1], 1 }
 0x37d   :  { %5284 = vsyncpa [#allocation6], 1 }
 0x37e   :  { %5285 = vsyncpa [#allocation4], 1 }
 0x37f   :  { %5287 = vsyncpa [#allocation4 + $0x1], 1 }

</bundles_post_ra>
